<compile_context>
chip_gen: v5e
topology: v5e:2x2
jax: 0.10.0
libtpu: 0.0.40
codegen_flags: <defaults>
</compile_context>

<pallas_src>
import math

import jax
import jax.numpy as jnp
from jax import lax
from jax.experimental import pallas as pl
from jax.experimental.pallas import tpu as pltpu

# --- config (small, consistent with the module: d_k = d_model // n_head) ---
D_MODEL = 32
N_HEAD = 4
D_K = D_MODEL // N_HEAD
BATCH = 2
SEQ = 16


def _self_attn_kernel(x_ref, hmask_ref, vmask_ref, w_ref, out_ref):
    batch, d_model, seq = x_ref.shape
    n_head = N_HEAD
    d_k = d_model // n_head
    neg_big = jnp.float32(-1e30)

    w_all = w_ref[...]                       # (d_model, 4*H*d_k) bf16, resident
    w_qkv = w_all[:, :3 * n_head * d_k]      # [Wq/sqrt(d_k) | Wk | Wv]
    w_o = w_all[:, 3 * n_head * d_k:]        # (d_model, d_out)

    # Stack both batches along sublanes, length-major: (B*L, D).  The two tiny
    # in-kernel XLU transposes replace a standalone XLA transpose kernel.
    x_rows = jnp.concatenate(
        [jnp.transpose(x_ref[b]) for b in range(batch)], axis=0)   # (B*L, D) f32

    # One fused Q|K|V projection for all heads and both batches (96-lane MXU
    # result, 32 sublanes filled).  bf16 operands, f32 accumulation.
    qkv = jnp.dot(x_rows.astype(jnp.bfloat16), w_qkv,
                  preferred_element_type=jnp.float32)              # (B*L, 3*H*d_k)

    head_rows = []
    for b in range(batch):                                         # unrolled
        hm = hmask_ref[b]                                          # (1, L); 1.0 == masked
        key_masked = jnp.broadcast_to(hm, (seq, seq)) != 0.0       # hoisted per batch
        r0 = b * seq
        head_cols = []
        for h in range(n_head):                                    # unrolled
            q = qkv[r0:r0 + seq, h * d_k:(h + 1) * d_k]
            k = qkv[r0:r0 + seq, (n_head + h) * d_k:(n_head + h + 1) * d_k]
            v = qkv[r0:r0 + seq, (2 * n_head + h) * d_k:(2 * n_head + h + 1) * d_k]

            # scores (L, L); 1/sqrt(d_k) already folded into the Wq columns.
            s = lax.dot_general(q.astype(jnp.bfloat16), k.astype(jnp.bfloat16),
                                (((1,), (1,)), ((), ())),
                                preferred_element_type=jnp.float32)
            # mask_logits == where(mask, -1e30, s); softmax math kept in f32.
            s = jnp.where(key_masked, neg_big, s)
            s_max = jnp.max(s, axis=-1, keepdims=True)
            e = jnp.exp(s - s_max)
            p = e * pl.reciprocal(jnp.sum(e, axis=-1, keepdims=True), approx=False)

            # (L, d_k) head output, length-major.
            head_cols.append(
                jnp.dot(p.astype(jnp.bfloat16), v.astype(jnp.bfloat16),
                        preferred_element_type=jnp.float32))
        head_rows.append(jnp.concatenate(head_cols, axis=1))        # (L, H*d_k)

    head = jnp.concatenate(head_rows, axis=0)                       # (B*L, H*d_k)

    # Single output projection (K = d_model).  The query-row ("vmask") factor
    # commutes with the linear V / Wo products, so apply it once at the end.
    out = jnp.dot(head.astype(jnp.bfloat16), w_o,
                  preferred_element_type=jnp.float32)               # (B*L, d_out)
    out_ref[...] = (out * vmask_ref[...]).astype(out_ref.dtype)


def pack_weights(wq, wk, wv, wo):
    """One-time parameter packing: [Wq/sqrt(d_k) | Wk | Wv | Wo] -> (D, 4*H*d_k)
    in bf16 (MXU operand dtype)."""
    H, D, dk = wq.shape
    scale = 1.0 / math.sqrt(dk)
    pack_cols = lambda w: jnp.transpose(w, (1, 0, 2)).reshape(D, H * dk)
    w_all = jnp.concatenate(
        [pack_cols(wq) * scale, pack_cols(wk), pack_cols(wv), wo], axis=1)
    return w_all.astype(jnp.bfloat16)


@jax.jit
def self_attention(x, mask, w_all):
    """x: (B, d_model, L); mask: (B, L) float {0,1} (1 = masked);
    w_all: packed (d_model, 4*H*d_k) bf16 from pack_weights().
    Returns (B, d_model, L), matching the PyTorch module's forward."""
    B, D, L = x.shape
    hmask = mask[:, None, :]                 # (B, 1, L)  key-column mask
    vmask = mask.reshape(B * L, 1)           # (B*L, 1)   query-row mask (bitcast reshape)

    out_rows = pl.pallas_call(
        _self_attn_kernel,
        out_shape=jax.ShapeDtypeStruct((B * L, D), jnp.float32),
        grid_spec=pltpu.PrefetchScalarGridSpec(
            num_scalar_prefetch=0,
            grid=(1,),                                       # single fused step
            in_specs=[
                pl.BlockSpec((B, D, L), lambda i: (0, 0, 0)),     # x (native layout)
                pl.BlockSpec((B, 1, L), lambda i: (0, 0, 0)),     # key mask rows
                pl.BlockSpec((B * L, 1), lambda i: (0, 0)),       # query mask column
                pl.BlockSpec(w_all.shape, lambda i: (0, 0)),      # one packed weight slab
            ],
            out_specs=pl.BlockSpec((B * L, D), lambda i: (0, 0)),
        ),
        compiler_params=pltpu.CompilerParams(
            dimension_semantics=("arbitrary",)),
    )(x, hmask, vmask, w_all)

    # Cheap layout change back to the module's native (B, d_model, L).
    return jnp.transpose(out_rows.reshape(B, L, D), (0, 2, 1))


def _reference(x, mask, wq, wk, wv, wo):
    """Pure-JAX (f32) replica of the PyTorch forward, for a correctness check."""
    x_t = jnp.transpose(x, (0, 2, 1))                      # (B, L, D)
    hmask = mask[:, None, :]
    vmask = mask[:, :, None]
    scale = 1.0 / math.sqrt(D_K)
    heads = []
    for i in range(N_HEAD):
        q = x_t @ wq[i]
        k = x_t @ wk[i]
        v = x_t @ wv[i]
        s = jnp.einsum("blk,bmk->blm", q, k) * scale
        s = s * (1.0 - hmask) + hmask * (-1e30)
        p = jax.nn.softmax(s, axis=2) * vmask
        heads.append(jnp.einsum("blm,bmd->bld", p, v))
    head = jnp.concatenate(heads, axis=2)
    out = head @ wo
    return jnp.transpose(out, (0, 2, 1))


def _init_params(key):
    k_o, k_q, k_k, k_v = jax.random.split(key, 4)
    # kaiming_uniform_ (a=0, fan_in = d_k * n_head): bound = sqrt(6 / fan_in)
    bound_o = math.sqrt(6.0 / (D_K * N_HEAD))
    wo = jax.random.uniform(k_o, (D_MODEL, D_K * N_HEAD), jnp.float32,
                            -bound_o, bound_o)
    # xavier_uniform_: bound = sqrt(6 / (fan_in + fan_out))
    bound_x = math.sqrt(6.0 / (D_MODEL + D_K))
    wq = jax.random.uniform(k_q, (N_HEAD, D_MODEL, D_K), jnp.float32,
                            -bound_x, bound_x)
    wk = jax.random.uniform(k_k, (N_HEAD, D_MODEL, D_K), jnp.float32,
                            -bound_x, bound_x)
    wv = jax.random.uniform(k_v, (N_HEAD, D_MODEL, D_K), jnp.float32,
                            -bound_x, bound_x)
    return wq, wk, wv, wo


if __name__ == "__main__":
    key = jax.random.PRNGKey(0)
    k_param, k_x, k_m = jax.random.split(key, 3)

    wq, wk, wv, wo = _init_params(k_param)

    x = jax.random.normal(k_x, (BATCH, D_MODEL, SEQ), jnp.float32)
    # mask: 1.0 = masked position (as used by mask_logits), ~20% masked
    mask = (jax.random.uniform(k_m, (BATCH, SEQ)) < 0.2).astype(jnp.float32)

    w_all = pack_weights(wq, wk, wv, wo)      # one-time parameter packing
    out = jax.block_until_ready(self_attention(x, mask, w_all))
    ref = jax.block_until_ready(_reference(x, mask, wq, wk, wv, wo))

    assert out.shape == (BATCH, D_MODEL, SEQ)
    # bf16 MXU operands -> loosened tolerance (mask/softmax math stays f32).
    assert jnp.allclose(out, ref, rtol=5e-2, atol=5e-2), \
        float(jnp.max(jnp.abs(out - ref)))
    print("KERNEL_OK")
</pallas_src>

<mosaic_0001>
module attributes {stable_mosaic.version = 11 : i64} {
  func.func @_self_attn_kernel(%arg0: i32, %arg1: memref<2x32x16xf32, #tpu.memory_space<vmem>>, %arg2: memref<2x1x16xf32, #tpu.memory_space<vmem>>, %arg3: memref<32x1xf32, #tpu.memory_space<vmem>>, %arg4: memref<32x128xbf16, #tpu.memory_space<vmem>>, %arg5: memref<32x32xf32, #tpu.memory_space<vmem>>) attributes {dimension_semantics = [#tpu.dimension_semantics<arbitrary>], iteration_bounds = array<i64: 1>, scalar_prefetch = 0 : i64, scratch_operands = 0 : i64, tpu.core_type = #tpu.core_type<tc>, window_params = [{pipeline_mode = #tpu.pipeline_mode<synchronous>, transform_indices = @transform_0, window_bounds = array<i64: 2, 32, 16>}, {pipeline_mode = #tpu.pipeline_mode<synchronous>, transform_indices = @transform_1, window_bounds = array<i64: 2, 1, 16>}, {pipeline_mode = #tpu.pipeline_mode<synchronous>, transform_indices = @transform_2, window_bounds = array<i64: 32, 1>}, {pipeline_mode = #tpu.pipeline_mode<synchronous>, transform_indices = @transform_3, window_bounds = array<i64: 32, 128>}, {pipeline_mode = #tpu.pipeline_mode<synchronous>, transform_indices = @transform_4, window_bounds = array<i64: 32, 32>}]} {
    %c0 = arith.constant 0 : index
    %c0_0 = arith.constant 0 : index
    %0 = vector.load %arg4[%c0, %c0_0] : memref<32x128xbf16, #tpu.memory_space<vmem>>, vector<32x128xbf16>
    %1 = vector.extract_strided_slice %0 {offsets = [0, 0], sizes = [32, 96], strides = [1, 1]} : vector<32x128xbf16> to vector<32x96xbf16>
    %2 = vector.extract_strided_slice %0 {offsets = [0, 96], sizes = [32, 32], strides = [1, 1]} : vector<32x128xbf16> to vector<32x32xbf16>
    %c0_1 = arith.constant 0 : index
    %c0_2 = arith.constant 0 : index
    %c0_3 = arith.constant 0 : index
    %3 = vector.load %arg1[%c0_1, %c0_2, %c0_3] : memref<2x32x16xf32, #tpu.memory_space<vmem>>, vector<1x32x16xf32>
    %4 = vector.shape_cast %3 : vector<1x32x16xf32> to vector<32x16xf32>
    %5 = tpu.transpose %4, [1, 0] : vector<32x16xf32> -> vector<16x32xf32>
    %c1 = arith.constant 1 : index
    %c0_4 = arith.constant 0 : index
    %c0_5 = arith.constant 0 : index
    %6 = vector.load %arg1[%c1, %c0_4, %c0_5] : memref<2x32x16xf32, #tpu.memory_space<vmem>>, vector<1x32x16xf32>
    %7 = vector.shape_cast %6 : vector<1x32x16xf32> to vector<32x16xf32>
    %8 = tpu.transpose %7, [1, 0] : vector<32x16xf32> -> vector<16x32xf32>
    %9 = tpu.concatenate %5, %8 in 0 : vector<16x32xf32>, vector<16x32xf32> -> vector<32x32xf32>
    %10 = arith.truncf %9 : vector<32x32xf32> to vector<32x32xbf16>
    %cst = arith.constant dense<0.000000e+00> : vector<32x96xf32>
    %11 = tpu.matmul %10, %1, %cst {dimension_numbers = #tpu.dot_dimension_numbers<[1], [0], [0], [1], [0, 0, 1, 1], [], []>} : vector<32x32xbf16>, vector<32x96xbf16>, vector<32x96xf32> -> vector<32x96xf32>
    %c0_6 = arith.constant 0 : index
    %c0_7 = arith.constant 0 : index
    %c0_8 = arith.constant 0 : index
    %12 = vector.load %arg2[%c0_6, %c0_7, %c0_8] : memref<2x1x16xf32, #tpu.memory_space<vmem>>, vector<1x1x16xf32>
    %13 = vector.shape_cast %12 : vector<1x1x16xf32> to vector<1x16xf32>
    %14 = vector.shape_cast %13 : vector<1x16xf32> to vector<1x16xf32>
    %15 = vector.broadcast %14 : vector<1x16xf32> to vector<16x16xf32>
    %cst_9 = arith.constant 0.000000e+00 : f32
    %16 = vector.broadcast %cst_9 : f32 to vector<16x16xf32>
    %17 = arith.cmpf one, %15, %16 : vector<16x16xf32>
    %18 = vector.extract_strided_slice %11 {offsets = [0, 0], sizes = [16, 8], strides = [1, 1]} : vector<32x96xf32> to vector<16x8xf32>
    %19 = vector.extract_strided_slice %11 {offsets = [0, 32], sizes = [16, 8], strides = [1, 1]} : vector<32x96xf32> to vector<16x8xf32>
    %20 = vector.extract_strided_slice %11 {offsets = [0, 64], sizes = [16, 8], strides = [1, 1]} : vector<32x96xf32> to vector<16x8xf32>
    %21 = arith.truncf %18 : vector<16x8xf32> to vector<16x8xbf16>
    %22 = arith.truncf %19 : vector<16x8xf32> to vector<16x8xbf16>
    %cst_10 = arith.constant dense<0.000000e+00> : vector<16x16xf32>
    %23 = tpu.matmul %21, %22, %cst_10 {dimension_numbers = #tpu.dot_dimension_numbers<[1], [1], [0], [0], [0, 0, 1, 0], [], []>} : vector<16x8xbf16>, vector<16x8xbf16>, vector<16x16xf32> -> vector<16x16xf32>
    %cst_11 = arith.constant -1.000000e+30 : f32
    %24 = vector.broadcast %cst_11 : f32 to vector<16x16xf32>
    %25 = arith.select %17, %24, %23 : vector<16x16xi1>, vector<16x16xf32>
    %cst_12 = arith.constant dense<0xFF800000> : vector<16xf32>
    %26 = vector.multi_reduction <maximumf>, %25, %cst_12 [1] : vector<16x16xf32> to vector<16xf32>
    %27 = vector.shape_cast %26 : vector<16xf32> to vector<16x1xf32>
    %28 = vector.broadcast %27 : vector<16x1xf32> to vector<16x16xf32>
    %29 = arith.subf %25, %28 : vector<16x16xf32>
    %30 = math.exp %29 : vector<16x16xf32>
    %cst_13 = arith.constant dense<0.000000e+00> : vector<16xf32>
    %31 = vector.multi_reduction <add>, %30, %cst_13 [1] : vector<16x16xf32> to vector<16xf32>
    %32 = vector.shape_cast %31 : vector<16xf32> to vector<16x1xf32>
    %33 = tpu.reciprocal %32 : vector<16x1xf32> -> vector<16x1xf32>
    %34 = vector.broadcast %33 : vector<16x1xf32> to vector<16x16xf32>
    %35 = arith.mulf %30, %34 : vector<16x16xf32>
    %36 = arith.truncf %35 : vector<16x16xf32> to vector<16x16xbf16>
    %37 = arith.truncf %20 : vector<16x8xf32> to vector<16x8xbf16>
    %cst_14 = arith.constant dense<0.000000e+00> : vector<16x8xf32>
    %38 = tpu.matmul %36, %37, %cst_14 {dimension_numbers = #tpu.dot_dimension_numbers<[1], [0], [0], [1], [0, 0, 1, 1], [], []>} : vector<16x16xbf16>, vector<16x8xbf16>, vector<16x8xf32> -> vector<16x8xf32>
    %39 = vector.extract_strided_slice %11 {offsets = [0, 8], sizes = [16, 8], strides = [1, 1]} : vector<32x96xf32> to vector<16x8xf32>
    %40 = vector.extract_strided_slice %11 {offsets = [0, 40], sizes = [16, 8], strides = [1, 1]} : vector<32x96xf32> to vector<16x8xf32>
    %41 = vector.extract_strided_slice %11 {offsets = [0, 72], sizes = [16, 8], strides = [1, 1]} : vector<32x96xf32> to vector<16x8xf32>
    %42 = arith.truncf %39 : vector<16x8xf32> to vector<16x8xbf16>
    %43 = arith.truncf %40 : vector<16x8xf32> to vector<16x8xbf16>
    %cst_15 = arith.constant dense<0.000000e+00> : vector<16x16xf32>
    %44 = tpu.matmul %42, %43, %cst_15 {dimension_numbers = #tpu.dot_dimension_numbers<[1], [1], [0], [0], [0, 0, 1, 0], [], []>} : vector<16x8xbf16>, vector<16x8xbf16>, vector<16x16xf32> -> vector<16x16xf32>
    %cst_16 = arith.constant -1.000000e+30 : f32
    %45 = vector.broadcast %cst_16 : f32 to vector<16x16xf32>
    %46 = arith.select %17, %45, %44 : vector<16x16xi1>, vector<16x16xf32>
    %cst_17 = arith.constant dense<0xFF800000> : vector<16xf32>
    %47 = vector.multi_reduction <maximumf>, %46, %cst_17 [1] : vector<16x16xf32> to vector<16xf32>
    %48 = vector.shape_cast %47 : vector<16xf32> to vector<16x1xf32>
    %49 = vector.broadcast %48 : vector<16x1xf32> to vector<16x16xf32>
    %50 = arith.subf %46, %49 : vector<16x16xf32>
    %51 = math.exp %50 : vector<16x16xf32>
    %cst_18 = arith.constant dense<0.000000e+00> : vector<16xf32>
    %52 = vector.multi_reduction <add>, %51, %cst_18 [1] : vector<16x16xf32> to vector<16xf32>
    %53 = vector.shape_cast %52 : vector<16xf32> to vector<16x1xf32>
    %54 = tpu.reciprocal %53 : vector<16x1xf32> -> vector<16x1xf32>
    %55 = vector.broadcast %54 : vector<16x1xf32> to vector<16x16xf32>
    %56 = arith.mulf %51, %55 : vector<16x16xf32>
    %57 = arith.truncf %56 : vector<16x16xf32> to vector<16x16xbf16>
    %58 = arith.truncf %41 : vector<16x8xf32> to vector<16x8xbf16>
    %cst_19 = arith.constant dense<0.000000e+00> : vector<16x8xf32>
    %59 = tpu.matmul %57, %58, %cst_19 {dimension_numbers = #tpu.dot_dimension_numbers<[1], [0], [0], [1], [0, 0, 1, 1], [], []>} : vector<16x16xbf16>, vector<16x8xbf16>, vector<16x8xf32> -> vector<16x8xf32>
    %60 = vector.extract_strided_slice %11 {offsets = [0, 16], sizes = [16, 8], strides = [1, 1]} : vector<32x96xf32> to vector<16x8xf32>
    %61 = vector.extract_strided_slice %11 {offsets = [0, 48], sizes = [16, 8], strides = [1, 1]} : vector<32x96xf32> to vector<16x8xf32>
    %62 = vector.extract_strided_slice %11 {offsets = [0, 80], sizes = [16, 8], strides = [1, 1]} : vector<32x96xf32> to vector<16x8xf32>
    %63 = arith.truncf %60 : vector<16x8xf32> to vector<16x8xbf16>
    %64 = arith.truncf %61 : vector<16x8xf32> to vector<16x8xbf16>
    %cst_20 = arith.constant dense<0.000000e+00> : vector<16x16xf32>
    %65 = tpu.matmul %63, %64, %cst_20 {dimension_numbers = #tpu.dot_dimension_numbers<[1], [1], [0], [0], [0, 0, 1, 0], [], []>} : vector<16x8xbf16>, vector<16x8xbf16>, vector<16x16xf32> -> vector<16x16xf32>
    %cst_21 = arith.constant -1.000000e+30 : f32
    %66 = vector.broadcast %cst_21 : f32 to vector<16x16xf32>
    %67 = arith.select %17, %66, %65 : vector<16x16xi1>, vector<16x16xf32>
    %cst_22 = arith.constant dense<0xFF800000> : vector<16xf32>
    %68 = vector.multi_reduction <maximumf>, %67, %cst_22 [1] : vector<16x16xf32> to vector<16xf32>
    %69 = vector.shape_cast %68 : vector<16xf32> to vector<16x1xf32>
    %70 = vector.broadcast %69 : vector<16x1xf32> to vector<16x16xf32>
    %71 = arith.subf %67, %70 : vector<16x16xf32>
    %72 = math.exp %71 : vector<16x16xf32>
    %cst_23 = arith.constant dense<0.000000e+00> : vector<16xf32>
    %73 = vector.multi_reduction <add>, %72, %cst_23 [1] : vector<16x16xf32> to vector<16xf32>
    %74 = vector.shape_cast %73 : vector<16xf32> to vector<16x1xf32>
    %75 = tpu.reciprocal %74 : vector<16x1xf32> -> vector<16x1xf32>
    %76 = vector.broadcast %75 : vector<16x1xf32> to vector<16x16xf32>
    %77 = arith.mulf %72, %76 : vector<16x16xf32>
    %78 = arith.truncf %77 : vector<16x16xf32> to vector<16x16xbf16>
    %79 = arith.truncf %62 : vector<16x8xf32> to vector<16x8xbf16>
    %cst_24 = arith.constant dense<0.000000e+00> : vector<16x8xf32>
    %80 = tpu.matmul %78, %79, %cst_24 {dimension_numbers = #tpu.dot_dimension_numbers<[1], [0], [0], [1], [0, 0, 1, 1], [], []>} : vector<16x16xbf16>, vector<16x8xbf16>, vector<16x8xf32> -> vector<16x8xf32>
    %81 = vector.extract_strided_slice %11 {offsets = [0, 24], sizes = [16, 8], strides = [1, 1]} : vector<32x96xf32> to vector<16x8xf32>
    %82 = vector.extract_strided_slice %11 {offsets = [0, 56], sizes = [16, 8], strides = [1, 1]} : vector<32x96xf32> to vector<16x8xf32>
    %83 = vector.extract_strided_slice %11 {offsets = [0, 88], sizes = [16, 8], strides = [1, 1]} : vector<32x96xf32> to vector<16x8xf32>
    %84 = arith.truncf %81 : vector<16x8xf32> to vector<16x8xbf16>
    %85 = arith.truncf %82 : vector<16x8xf32> to vector<16x8xbf16>
    %cst_25 = arith.constant dense<0.000000e+00> : vector<16x16xf32>
    %86 = tpu.matmul %84, %85, %cst_25 {dimension_numbers = #tpu.dot_dimension_numbers<[1], [1], [0], [0], [0, 0, 1, 0], [], []>} : vector<16x8xbf16>, vector<16x8xbf16>, vector<16x16xf32> -> vector<16x16xf32>
    %cst_26 = arith.constant -1.000000e+30 : f32
    %87 = vector.broadcast %cst_26 : f32 to vector<16x16xf32>
    %88 = arith.select %17, %87, %86 : vector<16x16xi1>, vector<16x16xf32>
    %cst_27 = arith.constant dense<0xFF800000> : vector<16xf32>
    %89 = vector.multi_reduction <maximumf>, %88, %cst_27 [1] : vector<16x16xf32> to vector<16xf32>
    %90 = vector.shape_cast %89 : vector<16xf32> to vector<16x1xf32>
    %91 = vector.broadcast %90 : vector<16x1xf32> to vector<16x16xf32>
    %92 = arith.subf %88, %91 : vector<16x16xf32>
    %93 = math.exp %92 : vector<16x16xf32>
    %cst_28 = arith.constant dense<0.000000e+00> : vector<16xf32>
    %94 = vector.multi_reduction <add>, %93, %cst_28 [1] : vector<16x16xf32> to vector<16xf32>
    %95 = vector.shape_cast %94 : vector<16xf32> to vector<16x1xf32>
    %96 = tpu.reciprocal %95 : vector<16x1xf32> -> vector<16x1xf32>
    %97 = vector.broadcast %96 : vector<16x1xf32> to vector<16x16xf32>
    %98 = arith.mulf %93, %97 : vector<16x16xf32>
    %99 = arith.truncf %98 : vector<16x16xf32> to vector<16x16xbf16>
    %100 = arith.truncf %83 : vector<16x8xf32> to vector<16x8xbf16>
    %cst_29 = arith.constant dense<0.000000e+00> : vector<16x8xf32>
    %101 = tpu.matmul %99, %100, %cst_29 {dimension_numbers = #tpu.dot_dimension_numbers<[1], [0], [0], [1], [0, 0, 1, 1], [], []>} : vector<16x16xbf16>, vector<16x8xbf16>, vector<16x8xf32> -> vector<16x8xf32>
    %102 = tpu.concatenate %38, %59, %80, %101 in 1 : vector<16x8xf32>, vector<16x8xf32>, vector<16x8xf32>, vector<16x8xf32> -> vector<16x32xf32>
    %c1_30 = arith.constant 1 : index
    %c0_31 = arith.constant 0 : index
    %c0_32 = arith.constant 0 : index
    %103 = vector.load %arg2[%c1_30, %c0_31, %c0_32] : memref<2x1x16xf32, #tpu.memory_space<vmem>>, vector<1x1x16xf32>
    %104 = vector.shape_cast %103 : vector<1x1x16xf32> to vector<1x16xf32>
    %105 = vector.shape_cast %104 : vector<1x16xf32> to vector<1x16xf32>
    %106 = vector.broadcast %105 : vector<1x16xf32> to vector<16x16xf32>
    %cst_33 = arith.constant 0.000000e+00 : f32
    %107 = vector.broadcast %cst_33 : f32 to vector<16x16xf32>
    %108 = arith.cmpf one, %106, %107 : vector<16x16xf32>
    %109 = vector.extract_strided_slice %11 {offsets = [16, 0], sizes = [16, 8], strides = [1, 1]} : vector<32x96xf32> to vector<16x8xf32>
    %110 = vector.extract_strided_slice %11 {offsets = [16, 32], sizes = [16, 8], strides = [1, 1]} : vector<32x96xf32> to vector<16x8xf32>
    %111 = vector.extract_strided_slice %11 {offsets = [16, 64], sizes = [16, 8], strides = [1, 1]} : vector<32x96xf32> to vector<16x8xf32>
    %112 = arith.truncf %109 : vector<16x8xf32> to vector<16x8xbf16>
    %113 = arith.truncf %110 : vector<16x8xf32> to vector<16x8xbf16>
    %cst_34 = arith.constant dense<0.000000e+00> : vector<16x16xf32>
    %114 = tpu.matmul %112, %113, %cst_34 {dimension_numbers = #tpu.dot_dimension_numbers<[1], [1], [0], [0], [0, 0, 1, 0], [], []>} : vector<16x8xbf16>, vector<16x8xbf16>, vector<16x16xf32> -> vector<16x16xf32>
    %cst_35 = arith.constant -1.000000e+30 : f32
    %115 = vector.broadcast %cst_35 : f32 to vector<16x16xf32>
    %116 = arith.select %108, %115, %114 : vector<16x16xi1>, vector<16x16xf32>
    %cst_36 = arith.constant dense<0xFF800000> : vector<16xf32>
    %117 = vector.multi_reduction <maximumf>, %116, %cst_36 [1] : vector<16x16xf32> to vector<16xf32>
    %118 = vector.shape_cast %117 : vector<16xf32> to vector<16x1xf32>
    %119 = vector.broadcast %118 : vector<16x1xf32> to vector<16x16xf32>
    %120 = arith.subf %116, %119 : vector<16x16xf32>
    %121 = math.exp %120 : vector<16x16xf32>
    %cst_37 = arith.constant dense<0.000000e+00> : vector<16xf32>
    %122 = vector.multi_reduction <add>, %121, %cst_37 [1] : vector<16x16xf32> to vector<16xf32>
    %123 = vector.shape_cast %122 : vector<16xf32> to vector<16x1xf32>
    %124 = tpu.reciprocal %123 : vector<16x1xf32> -> vector<16x1xf32>
    %125 = vector.broadcast %124 : vector<16x1xf32> to vector<16x16xf32>
    %126 = arith.mulf %121, %125 : vector<16x16xf32>
    %127 = arith.truncf %126 : vector<16x16xf32> to vector<16x16xbf16>
    %128 = arith.truncf %111 : vector<16x8xf32> to vector<16x8xbf16>
    %cst_38 = arith.constant dense<0.000000e+00> : vector<16x8xf32>
    %129 = tpu.matmul %127, %128, %cst_38 {dimension_numbers = #tpu.dot_dimension_numbers<[1], [0], [0], [1], [0, 0, 1, 1], [], []>} : vector<16x16xbf16>, vector<16x8xbf16>, vector<16x8xf32> -> vector<16x8xf32>
    %130 = vector.extract_strided_slice %11 {offsets = [16, 8], sizes = [16, 8], strides = [1, 1]} : vector<32x96xf32> to vector<16x8xf32>
    %131 = vector.extract_strided_slice %11 {offsets = [16, 40], sizes = [16, 8], strides = [1, 1]} : vector<32x96xf32> to vector<16x8xf32>
    %132 = vector.extract_strided_slice %11 {offsets = [16, 72], sizes = [16, 8], strides = [1, 1]} : vector<32x96xf32> to vector<16x8xf32>
    %133 = arith.truncf %130 : vector<16x8xf32> to vector<16x8xbf16>
    %134 = arith.truncf %131 : vector<16x8xf32> to vector<16x8xbf16>
    %cst_39 = arith.constant dense<0.000000e+00> : vector<16x16xf32>
    %135 = tpu.matmul %133, %134, %cst_39 {dimension_numbers = #tpu.dot_dimension_numbers<[1], [1], [0], [0], [0, 0, 1, 0], [], []>} : vector<16x8xbf16>, vector<16x8xbf16>, vector<16x16xf32> -> vector<16x16xf32>
    %cst_40 = arith.constant -1.000000e+30 : f32
    %136 = vector.broadcast %cst_40 : f32 to vector<16x16xf32>
    %137 = arith.select %108, %136, %135 : vector<16x16xi1>, vector<16x16xf32>
    %cst_41 = arith.constant dense<0xFF800000> : vector<16xf32>
    %138 = vector.multi_reduction <maximumf>, %137, %cst_41 [1] : vector<16x16xf32> to vector<16xf32>
    %139 = vector.shape_cast %138 : vector<16xf32> to vector<16x1xf32>
    %140 = vector.broadcast %139 : vector<16x1xf32> to vector<16x16xf32>
    %141 = arith.subf %137, %140 : vector<16x16xf32>
    %142 = math.exp %141 : vector<16x16xf32>
    %cst_42 = arith.constant dense<0.000000e+00> : vector<16xf32>
    %143 = vector.multi_reduction <add>, %142, %cst_42 [1] : vector<16x16xf32> to vector<16xf32>
    %144 = vector.shape_cast %143 : vector<16xf32> to vector<16x1xf32>
    %145 = tpu.reciprocal %144 : vector<16x1xf32> -> vector<16x1xf32>
    %146 = vector.broadcast %145 : vector<16x1xf32> to vector<16x16xf32>
    %147 = arith.mulf %142, %146 : vector<16x16xf32>
    %148 = arith.truncf %147 : vector<16x16xf32> to vector<16x16xbf16>
    %149 = arith.truncf %132 : vector<16x8xf32> to vector<16x8xbf16>
    %cst_43 = arith.constant dense<0.000000e+00> : vector<16x8xf32>
    %150 = tpu.matmul %148, %149, %cst_43 {dimension_numbers = #tpu.dot_dimension_numbers<[1], [0], [0], [1], [0, 0, 1, 1], [], []>} : vector<16x16xbf16>, vector<16x8xbf16>, vector<16x8xf32> -> vector<16x8xf32>
    %151 = vector.extract_strided_slice %11 {offsets = [16, 16], sizes = [16, 8], strides = [1, 1]} : vector<32x96xf32> to vector<16x8xf32>
    %152 = vector.extract_strided_slice %11 {offsets = [16, 48], sizes = [16, 8], strides = [1, 1]} : vector<32x96xf32> to vector<16x8xf32>
    %153 = vector.extract_strided_slice %11 {offsets = [16, 80], sizes = [16, 8], strides = [1, 1]} : vector<32x96xf32> to vector<16x8xf32>
    %154 = arith.truncf %151 : vector<16x8xf32> to vector<16x8xbf16>
    %155 = arith.truncf %152 : vector<16x8xf32> to vector<16x8xbf16>
    %cst_44 = arith.constant dense<0.000000e+00> : vector<16x16xf32>
    %156 = tpu.matmul %154, %155, %cst_44 {dimension_numbers = #tpu.dot_dimension_numbers<[1], [1], [0], [0], [0, 0, 1, 0], [], []>} : vector<16x8xbf16>, vector<16x8xbf16>, vector<16x16xf32> -> vector<16x16xf32>
    %cst_45 = arith.constant -1.000000e+30 : f32
    %157 = vector.broadcast %cst_45 : f32 to vector<16x16xf32>
    %158 = arith.select %108, %157, %156 : vector<16x16xi1>, vector<16x16xf32>
    %cst_46 = arith.constant dense<0xFF800000> : vector<16xf32>
    %159 = vector.multi_reduction <maximumf>, %158, %cst_46 [1] : vector<16x16xf32> to vector<16xf32>
    %160 = vector.shape_cast %159 : vector<16xf32> to vector<16x1xf32>
    %161 = vector.broadcast %160 : vector<16x1xf32> to vector<16x16xf32>
    %162 = arith.subf %158, %161 : vector<16x16xf32>
    %163 = math.exp %162 : vector<16x16xf32>
    %cst_47 = arith.constant dense<0.000000e+00> : vector<16xf32>
    %164 = vector.multi_reduction <add>, %163, %cst_47 [1] : vector<16x16xf32> to vector<16xf32>
    %165 = vector.shape_cast %164 : vector<16xf32> to vector<16x1xf32>
    %166 = tpu.reciprocal %165 : vector<16x1xf32> -> vector<16x1xf32>
    %167 = vector.broadcast %166 : vector<16x1xf32> to vector<16x16xf32>
    %168 = arith.mulf %163, %167 : vector<16x16xf32>
    %169 = arith.truncf %168 : vector<16x16xf32> to vector<16x16xbf16>
    %170 = arith.truncf %153 : vector<16x8xf32> to vector<16x8xbf16>
    %cst_48 = arith.constant dense<0.000000e+00> : vector<16x8xf32>
    %171 = tpu.matmul %169, %170, %cst_48 {dimension_numbers = #tpu.dot_dimension_numbers<[1], [0], [0], [1], [0, 0, 1, 1], [], []>} : vector<16x16xbf16>, vector<16x8xbf16>, vector<16x8xf32> -> vector<16x8xf32>
    %172 = vector.extract_strided_slice %11 {offsets = [16, 24], sizes = [16, 8], strides = [1, 1]} : vector<32x96xf32> to vector<16x8xf32>
    %173 = vector.extract_strided_slice %11 {offsets = [16, 56], sizes = [16, 8], strides = [1, 1]} : vector<32x96xf32> to vector<16x8xf32>
    %174 = vector.extract_strided_slice %11 {offsets = [16, 88], sizes = [16, 8], strides = [1, 1]} : vector<32x96xf32> to vector<16x8xf32>
    %175 = arith.truncf %172 : vector<16x8xf32> to vector<16x8xbf16>
    %176 = arith.truncf %173 : vector<16x8xf32> to vector<16x8xbf16>
    %cst_49 = arith.constant dense<0.000000e+00> : vector<16x16xf32>
    %177 = tpu.matmul %175, %176, %cst_49 {dimension_numbers = #tpu.dot_dimension_numbers<[1], [1], [0], [0], [0, 0, 1, 0], [], []>} : vector<16x8xbf16>, vector<16x8xbf16>, vector<16x16xf32> -> vector<16x16xf32>
    %cst_50 = arith.constant -1.000000e+30 : f32
    %178 = vector.broadcast %cst_50 : f32 to vector<16x16xf32>
    %179 = arith.select %108, %178, %177 : vector<16x16xi1>, vector<16x16xf32>
    %cst_51 = arith.constant dense<0xFF800000> : vector<16xf32>
    %180 = vector.multi_reduction <maximumf>, %179, %cst_51 [1] : vector<16x16xf32> to vector<16xf32>
    %181 = vector.shape_cast %180 : vector<16xf32> to vector<16x1xf32>
    %182 = vector.broadcast %181 : vector<16x1xf32> to vector<16x16xf32>
    %183 = arith.subf %179, %182 : vector<16x16xf32>
    %184 = math.exp %183 : vector<16x16xf32>
    %cst_52 = arith.constant dense<0.000000e+00> : vector<16xf32>
    %185 = vector.multi_reduction <add>, %184, %cst_52 [1] : vector<16x16xf32> to vector<16xf32>
    %186 = vector.shape_cast %185 : vector<16xf32> to vector<16x1xf32>
    %187 = tpu.reciprocal %186 : vector<16x1xf32> -> vector<16x1xf32>
    %188 = vector.broadcast %187 : vector<16x1xf32> to vector<16x16xf32>
    %189 = arith.mulf %184, %188 : vector<16x16xf32>
    %190 = arith.truncf %189 : vector<16x16xf32> to vector<16x16xbf16>
    %191 = arith.truncf %174 : vector<16x8xf32> to vector<16x8xbf16>
    %cst_53 = arith.constant dense<0.000000e+00> : vector<16x8xf32>
    %192 = tpu.matmul %190, %191, %cst_53 {dimension_numbers = #tpu.dot_dimension_numbers<[1], [0], [0], [1], [0, 0, 1, 1], [], []>} : vector<16x16xbf16>, vector<16x8xbf16>, vector<16x8xf32> -> vector<16x8xf32>
    %193 = tpu.concatenate %129, %150, %171, %192 in 1 : vector<16x8xf32>, vector<16x8xf32>, vector<16x8xf32>, vector<16x8xf32> -> vector<16x32xf32>
    %194 = tpu.concatenate %102, %193 in 0 : vector<16x32xf32>, vector<16x32xf32> -> vector<32x32xf32>
    %195 = arith.truncf %194 : vector<32x32xf32> to vector<32x32xbf16>
    %cst_54 = arith.constant dense<0.000000e+00> : vector<32x32xf32>
    %196 = tpu.matmul %195, %2, %cst_54 {dimension_numbers = #tpu.dot_dimension_numbers<[1], [0], [0], [1], [0, 0, 1, 1], [], []>} : vector<32x32xbf16>, vector<32x32xbf16>, vector<32x32xf32> -> vector<32x32xf32>
    %c0_55 = arith.constant 0 : index
    %c0_56 = arith.constant 0 : index
    %197 = vector.load %arg3[%c0_55, %c0_56] : memref<32x1xf32, #tpu.memory_space<vmem>>, vector<32x1xf32>
    %198 = vector.broadcast %197 : vector<32x1xf32> to vector<32x32xf32>
    %199 = arith.mulf %196, %198 : vector<32x32xf32>
    %c0_57 = arith.constant 0 : index
    %c0_58 = arith.constant 0 : index
    %200 = vector.load %arg5[%c0_57, %c0_58] : memref<32x32xf32, #tpu.memory_space<vmem>>, vector<32x32xf32>
    tpu.vector_store %arg5[%c0_57, %c0_58], %199 {strides = array<i32>} : memref<32x32xf32, #tpu.memory_space<vmem>>, vector<32x32xf32>,
    return
  }
  func.func @transform_0(%arg0: i32) -> (i32, i32, i32) {
    %c0_i32 = arith.constant 0 : i32
    %c0_i32_0 = arith.constant 0 : i32
    %c0_i32_1 = arith.constant 0 : i32
    %c0_i32_2 = arith.constant 0 : i32
    return %c0_i32, %c0_i32_0, %c0_i32_1 : i32, i32, i32
  }
  func.func @transform_1(%arg0: i32) -> (i32, i32, i32) {
    %c0_i32 = arith.constant 0 : i32
    %c0_i32_0 = arith.constant 0 : i32
    %c0_i32_1 = arith.constant 0 : i32
    %c0_i32_2 = arith.constant 0 : i32
    return %c0_i32, %c0_i32_0, %c0_i32_1 : i32, i32, i32
  }
  func.func @transform_2(%arg0: i32) -> (i32, i32) {
    %c0_i32 = arith.constant 0 : i32
    %c0_i32_0 = arith.constant 0 : i32
    %c0_i32_1 = arith.constant 0 : i32
    return %c0_i32, %c0_i32_0 : i32, i32
  }
  func.func @transform_3(%arg0: i32) -> (i32, i32) {
    %c0_i32 = arith.constant 0 : i32
    %c0_i32_0 = arith.constant 0 : i32
    %c0_i32_1 = arith.constant 0 : i32
    return %c0_i32, %c0_i32_0 : i32, i32
  }
  func.func @transform_4(%arg0: i32) -> (i32, i32) {
    %c0_i32 = arith.constant 0 : i32
    %c0_i32_0 = arith.constant 0 : i32
    %c0_i32_1 = arith.constant 0 : i32
    return %c0_i32, %c0_i32_0 : i32, i32
  }
}

</mosaic_0001>

<bundles_post_ra>
// kernel: self_attention.1
= control target key start
LH: loop header
LB: loop body
LE: loop exit
PB: predicated region body
PF: predicated region fallthrough
CT: control target
= control target key end

     0   :  { %s1653_s0 = inlined_call_operand.vmem [shape: f32[2,32,16], index: 0, kind: input, shape index: {}]   ;;  %s1654_s1 = inlined_call_operand.vmem [shape: f32[2,1,16], index: 1, kind: input, shape index: {}]   ;;  %s1655_s2 = inlined_call_operand.vmem [shape: f32[32,1], index: 2, kind: input, shape index: {}]   ;;  %s1656_s3 = inlined_call_operand.vmem [shape: bf16[32,128], index: 3, kind: input, shape index: {}]   ;;  %s1657_s4 = inlined_call_operand.hbm [shape: f32[32,32], index: 4, kind: output, shape index: {}]  }
   0x1   :  { %v23_v0 = vld [vmem:[%s1653_s0] sm:$0xff] }
   0x2   :  { %27 = vxpose.xlu0.b32.start [1/4] (short) (narrow) %v23_v0, 16 }
   0x3   :  { %9 = vsyncpa [#allocation3], 0  ;;  %v24_v1 = vld [vmem:[%s1653_s0 + $0x8] sm:$0xff]  ;;  %v25_v2 = vld [vmem:[%s1653_s0 + $0x10] sm:$0xff]  ;;  %vm110_vm0 = vcmask 261120   ;;  %s1233_s27 = smov 120  }
   0x4   :  { %v26_v3 = vld [vmem:[%s1653_s0 + $0x18] sm:$0xff]  ;;  %v1087_v4 = vld [vmem:[%s1656_s3 + $0x8] sm:$0xff]  ;;  %v1294_v5 = vld [vmem:[%s1656_s3] sm:$0xff]  ;;  %s1234_s28 = smov 96   ;;  %s1235_s29 = smov 88   ;;  %vm145_vm1 = vcmask 64512  }
   0x5   :  { %123 = vmatpush.bf16.msra.mxu0 %v1087_v4  ;;  %v1053_v12 = vld [vmem:[%s1653_s0 + $0x20] sm:$0xff]  ;;  %v1054_v13 = vld [vmem:[%s1653_s0 + $0x28] sm:$0xff]  ;;  %v1055_v14 = vld [vmem:[%s1653_s0 + $0x30] sm:$0xff]  ;;  %vm168_vm3 = vcmask 130048   ;;  %s1236_s13 = smov 112   ;;  %s1237_s14 = smov 64  }
   0x6   :  { %v1056_v15 = vld [vmem:[%s1653_s0 + $0x38] sm:$0xff]  ;;  %v1327_v24 = vld [vmem:[%s1654_s1] ss:$0 sm:$0xff]  ;;  %s1238_s15 = smov 56   ;;  %s1239_s16 = smov 80  }
   0x7   :  { %vm140_vm2 = vcmp.ne.f32.partialorder %v1327_v24, 0.0  ;;  %s1240_s17 = smov 72   ;;  %s1241_s18 = smov 104  }
   0x8   :  { %s1243_s21 = smov 40   ;;  %s1244_s22 = smov 8  }
   0x9   :  { %124 = vmatpush.bf16.msra.mxu0 %v1294_v5  ;;  %s1245_s23 = smov 16   ;;  %s1246_s26 = smov 32  }
   0xa   :  { %28 = vxpose.xlu0.b32.cont [2/4] (short) (narrow) %v24_v1, 16  ;;  %s1041_s0 = sshll.u32 %s1657_s4, 4  ;;  %s1250_s12 = smov 128   ;;  %s1042_s0 = int_to_ptr.hbm [resolvable:$true] %s1041_s0 }
  0x12   :  { %29 = vxpose.xlu0.b32.cont [3/4] (short) (narrow) %v25_v2, 16 }
  0x1a   :  { %30 = vxpose.xlu0.b32.end [4/4] (short) (narrow) %v26_v3, 16 }
  0xa6   :  { %v43_v6 = vpop.trf.xlu0 }
  0xae   :  { %v44_v7 = vpop.trf.xlu0 }
  0xaf   :  { %v96_v8 = vpack.c.bf16 %v44_v7, %v43_v6 }
  0xb1   :  { %1065 = vmatmul.msk.bf16.vlgmr.msra.gmra.mxu0 %vm110_vm0, %v96_v8 }
 0x12e   :  { %v126_v9 = vpop.f32.mrf.mxu0 }
 0x136   :  { %v128_v10 = vpop.f32.mrf.mxu0 }
 0x137   :  { %v1298_v11 = vpack.c.bf16 %v128_v10, %v126_v9 }
 0x139   :  { %238 = vrot.lane.b32.xlu2 %v1298_v11, %s1233_s27  ;;  %143 = vrot.lane.b32.xlu1 %v1298_v11, %s1234_s28 }
 0x141   :  { %240 = vrot.lane.b32.xlu1 %v1298_v11, %s1235_s29 }
 0x15f   :  { %64 = vxpose.xlu2.b32.start [1/4] (short) (narrow) %v1053_v12, 16 }
 0x167   :  { %65 = vxpose.xlu2.b32.cont [2/4] (short) (narrow) %v1054_v13, 16 }
 0x16f   :  { %66 = vxpose.xlu2.b32.cont [3/4] (short) (narrow) %v1055_v14, 16 }
 0x177   :  { %67 = vxpose.xlu2.b32.end [4/4] (short) (narrow) %v1056_v15, 16 }
 0x193   :  { %v239_v20 = vpop.permute.xlu2 %238 }
 0x1ab   :  { %v144_v16 = vpop.permute.xlu1 %143 }
 0x1ac   :  { %v150_v17 = vsel %vm145_vm1, %v144_v16, 0 }
 0x1ad   :  { %159 = vmatpush.bf16.xpose.msra.mxu3 %v150_v17 }
 0x1b3   :  { %v241_v18 = vpop.permute.xlu1 %240 }
 0x1b4   :  { %1067 = vmatmul.msk.bf16.vlgmr.msra.gmra.mxu3 %vm145_vm1, %v1298_v11  ;;  %v246_v19 = vsel %vm145_vm1, %v241_v18, 0 }
 0x1b5   :  { %255 = vmatpush.bf16.xpose.msrb.mxu3 %v246_v19 }
 0x1c4   :  { %1069 = vmatmul.msk.bf16.vlgmr.msrb.gmra.mxu3 %vm145_vm1, %v239_v20 }
 0x1f8   :  { %v80_v21 = vpop.trf.xlu2 }
 0x200   :  { %v81_v22 = vpop.trf.xlu2 }
 0x201   :  { %v97_v23 = vpack.c.bf16 %v81_v22, %v80_v21 }
 0x203   :  { %1066 = vmatmul.msk.bf16.gmra.mxu0 %vm110_vm0, %v97_v23 }
 0x237   :  { %v161_v25 = vpop.f32.mrf.mxu3 }
 0x238   :  { %v166_v26 = vsel %vm140_vm2, -1e+30, %v161_v25 }
 0x239   :  { %v169_v27 = vsel %vm168_vm3, %v166_v26, -inf }
 0x23a   :  { %170 = vmax.xlane.f32.xlu1 %v169_v27 }
 0x23f   :  { %v163_v28 = vpop.f32.mrf.mxu3 }
 0x240   :  { %v167_v29 = vsel %vm140_vm2, -1e+30, %v163_v28 }
 0x241   :  { %v172_v30 = vsel %vm168_vm3, %v167_v29, -inf }
 0x242   :  { %173 = vmax.xlane.f32.xlu0 %v172_v30 }
 0x247   :  { %v257_v31 = vpop.f32.mrf.mxu3 }
 0x248   :  { %v262_v32 = vsel %vm140_vm2, -1e+30, %v257_v31 }
 0x249   :  { %v264_v33 = vsel %vm168_vm3, %v262_v32, -inf }
 0x24a   :  { %265 = vmax.xlane.f32.xlu1 %v264_v33 }
 0x24f   :  { %v259_v34 = vpop.f32.mrf.mxu3 }
 0x250   :  { %v263_v35 = vsel %vm140_vm2, -1e+30, %v259_v34 }
 0x251   :  { %v267_v36 = vsel %vm168_vm3, %v263_v35, -inf }
 0x252   :  { %268 = vmax.xlane.f32.xlu1 %v267_v36 }
 0x256   :  { %333 = vrot.lane.b32.xlu0 %v1298_v11, %s1236_s13 }
 0x26b   :  { %218 = vrot.lane.b32.xlu1 %v1298_v11, %s1237_s14 }
 0x273   :  { %313 = vrot.lane.b32.xlu1 %v1298_v11, %s1238_s15 }
 0x27b   :  { %335 = vrot.lane.b32.xlu1 %v1298_v11, %s1239_s16 }
 0x280   :  { %v131_v37 = vpop.f32.mrf.mxu0 }
 0x283   :  { %430 = vrot.lane.b32.xlu1 %v1298_v11, %s1240_s17 }
 0x288   :  { %v133_v38 = vpop.f32.mrf.mxu0 }
 0x289   :  { %v1352_v39 = vpack.c.bf16 %v133_v38, %v131_v37 }
 0x28b   :  { %428 = vrot.lane.b32.xlu1 %v1298_v11, %s1241_s18  ;;  %655 = vrot.lane.b32.xlu0 %v1352_v39, %s1233_s27 }
 0x293   :  { %847 = vrot.lane.b32.xlu0 %v1352_v39, %s1240_s17 }
 0x29b   :  { %845 = vrot.lane.b32.xlu0 %v1352_v39, %s1241_s18 }
 0x2ad   :  { %v171_v40 = vpop.xlane.xlu1 %170 }
 0x2ae   :  { %v175_v41 = vsub.f32 %v166_v26, %v171_v40 }
 0x2b0   :  { %v177_v42 = vmul.f32 1.442695, %v175_v41 }
 0x2b2   :  { %1142 = vpow2.f32 %v177_v42 }
 0x2b5   :  { %v174_v43 = vpop.xlane.xlu0 %173 }
 0x2b6   :  { %v176_v44 = vsub.f32 %v167_v29, %v174_v43 }
 0x2b8   :  { %v1357_v45 = vpop.eup %1142  ;;  %v179_v46 = vmul.f32 1.442695, %v176_v44 }
 0x2b9   :  { %v181_v47 = vsel %vm168_vm3, %v1357_v45, 0.0 }
 0x2ba   :  { %1144 = vpow2.f32 %v179_v46  ;;  %182 = vadd.xlane.f32.xlu2 %v181_v47 }
 0x2bd   :  { %v266_v48 = vpop.xlane.xlu1 %265 }
 0x2be   :  { %v270_v49 = vsub.f32 %v262_v32, %v266_v48 }
 0x2c0   :  { %v1362_v50 = vpop.eup %1144  ;;  %v272_v51 = vmul.f32 1.442695, %v270_v49 }
 0x2c1   :  { %v184_v52 = vsel %vm168_vm3, %v1362_v50, 0.0 }
 0x2c2   :  { %1146 = vpow2.f32 %v272_v51  ;;  %185 = vadd.xlane.f32.xlu1 %v184_v52 }
 0x2c5   :  { %v269_v53 = vpop.xlane.xlu1 %268 }
 0x2c6   :  { %v271_v54 = vsub.f32 %v263_v35, %v269_v53 }
 0x2c8   :  { %v1366_v55 = vpop.eup %1146  ;;  %v274_v56 = vmul.f32 1.442695, %v271_v54  ;;  %v334_v0 = vpop.permute.xlu0 %333 }
 0x2c9   :  { %v276_v57 = vsel %vm168_vm3, %v1366_v55, 0.0 }
 0x2ca   :  { %1148 = vpow2.f32 %v274_v56  ;;  %277 = vadd.xlane.f32.xlu1 %v276_v57 }
 0x2d0   :  { %v1370_v58 = vpop.eup %1148 }
 0x2d1   :  { %v279_v59 = vsel %vm168_vm3, %v1370_v58, 0.0 }
 0x2d2   :  { %280 = vadd.xlane.f32.xlu1 %v279_v59 }
 0x2dd   :  { %v219_v60 = vpop.permute.xlu1 %218 }
 0x2de   :  { %231 = vmatpush.bf16.msra.mxu2 %v219_v60 }
 0x2e5   :  { %v314_v61 = vpop.permute.xlu1 %313 }
 0x2e6   :  { %326 = vmatpush.bf16.msrb.mxu2 %v314_v61 }
 0x2eb   :  { %562 = vrot.lane.b32.xlu1 %v1352_v39, %s1234_s28 }
 0x2ed   :  { %v336_v62 = vpop.permute.xlu1 %335 }
 0x2ee   :  { %v341_v63 = vsel %vm145_vm1, %v336_v62, 0 }
 0x2ef   :  { %350 = vmatpush.bf16.xpose.msra.mxu1 %v341_v63 }
 0x2f3   :  { %657 = vrot.lane.b32.xlu1 %v1352_v39, %s1235_s29 }
 0x2f5   :  { %v431_v1 = vpop.permute.xlu1 %430 }
 0x2f6   :  { %1071 = vmatmul.msk.bf16.vlgmr.msra.gmra.mxu1 %vm145_vm1, %v334_v0  ;;  %v436_v40 = vsel %vm145_vm1, %v431_v1, 0 }
 0x2fb   :  { %752 = vrot.lane.b32.xlu1 %v1352_v39, %s1239_s16 }
 0x2fd   :  { %v1384_v2 = vpop.permute.xlu1 %428  ;;  %v656_v63 = vpop.permute.xlu0 %655 }
 0x303   :  { %750 = vrot.lane.b32.xlu1 %v1352_v39, %s1236_s13 }
 0x32d   :  { %v183_v3 = vpop.xlane.xlu2 %182 }
 0x32e   :  { %1150 = vrcp.f32 %v183_v3  ;;  %v198_v15 = vand.u32 2147483648, %v183_v3  ;;  %vm192_vm5 = vweird.f32 %v183_v3  ;;  %v196_v17 = vand.u32 2147483647, %v183_v3 }
 0x330   :  { %v199_v23 = vor.u32 1.1754944e-38, %v198_v15  ;;  %vm197_vm9 = vcmp.eq.f32.partialorder %v196_v17, 8.507059e+37 }
 0x334   :  { %v1151_v4 = vpop.eup %1150 }
 0x335   :  { %v188_v6 = vmul.f32 %v1151_v4, %v183_v3  ;;  %v186_v7 = vpop.xlane.xlu1 %185  ;;  %vm193_vm4 = vweird.f32 %v1151_v4  ;;  %v848_v3 = vpop.permute.xlu0 %847 }
 0x336   :  { %1152 = vrcp.f32 %v186_v7  ;;  %vm1386_vm6 = vmor %vm192_vm5, %vm193_vm4  ;;  %v212_v20 = vand.u32 2147483648, %v186_v7  ;;  %v210_v21 = vand.u32 2147483647, %v186_v7  ;;  %vm206_vm8 = vweird.f32 %v186_v7 }
 0x337   :  { %v189_v8 = vsub.f32 1.0, %v188_v6 }
 0x338   :  { %v213_v27 = vor.u32 1.1754944e-38, %v212_v20  ;;  %vm211_vm11 = vcmp.eq.f32.partialorder %v210_v21, 8.507059e+37 }
 0x339   :  { %v190_v9 = vmul.f32 %v1151_v4, %v189_v8 }
 0x33b   :  { %v191_v14 = vadd.f32 %v1151_v4, %v190_v9 }
 0x33c   :  { %v1153_v10 = vpop.eup %1152 }
 0x33d   :  { %v202_v12 = vmul.f32 %v1153_v10, %v186_v7  ;;  %v278_v13 = vpop.xlane.xlu1 %277  ;;  %vm207_vm7 = vweird.f32 %v1153_v10  ;;  %v195_v22 = vsel %vm1386_vm6, %v1151_v4, %v191_v14 }
 0x33e   :  { %1154 = vrcp.f32 %v278_v13  ;;  %vm208_vm10 = vmor %vm206_vm8, %vm207_vm7  ;;  %v200_v30 = vsel %vm197_vm9, %v199_v23, %v195_v22  ;;  %v293_v43 = vand.u32 2147483648, %v278_v13  ;;  %vm287_vm13 = vweird.f32 %v278_v13 }
 0x33f   :  { %v203_v16 = vsub.f32 1.0, %v202_v12  ;;  %v215_v34 = vmul.f32 %v1357_v45, %v200_v30  ;;  %v291_v44 = vand.u32 2147483647, %v278_v13 }
 0x341   :  { %v204_v19 = vmul.f32 %v1153_v10, %v203_v16  ;;  %vm292_vm4 = vcmp.eq.f32.partialorder %v291_v44, 8.507059e+37  ;;  %v1423_v16 = vld [vmem:[%s1654_s1 + $0x1] ss:$0 sm:$0xff]  ;;  %s1242_s1 = smov 48  }
 0x342   :  { %vm559_vm8 = vcmp.ne.f32.partialorder %v1423_v16, 0.0 }
 0x343   :  { %v205_v25 = vadd.f32 %v1153_v10, %v204_v19 }
 0x344   :  { %v1155_v26 = vpop.eup %1154 }
 0x345   :  { %v283_v28 = vmul.f32 %v1155_v26, %v278_v13  ;;  %v281_v29 = vpop.xlane.xlu1 %280  ;;  %v209_v31 = vsel %vm208_vm10, %v1153_v10, %v205_v25  ;;  %vm288_vm12 = vweird.f32 %v1155_v26  ;;  %v846_v13 = vpop.permute.xlu0 %845 }
 0x346   :  { %1156 = vrcp.f32 %v281_v29  ;;  %v214_v33 = vsel %vm211_vm11, %v213_v27, %v209_v31  ;;  %vm289_vm14 = vmor %vm287_vm13, %vm288_vm12  ;;  %v307_v47 = vand.u32 2147483648, %v281_v29  ;;  %v305_v49 = vand.u32 2147483647, %v281_v29 }
 0x347   :  { %v284_v32 = vsub.f32 1.0, %v283_v28  ;;  %v216_v35 = vmul.f32 %v1362_v50, %v214_v33  ;;  %v294_v50 = vor.u32 1.1754944e-38, %v293_v43  ;;  %vm301_vm5 = vweird.f32 %v281_v29 }
 0x348   :  { %v308_v52 = vor.u32 1.1754944e-38, %v307_v47  ;;  %vm306_vm7 = vcmp.eq.f32.partialorder %v305_v49, 8.507059e+37 }
 0x349   :  { %v285_v36 = vmul.f32 %v1155_v26, %v284_v32  ;;  %v217_v37 = vpack.c.bf16 %v216_v35, %v215_v34 }
 0x34b   :  { %1068 = vmatmul.msk.bf16.vlgmr.msra.gmra.mxu2 %vm168_vm3, %v217_v37  ;;  %v286_v41 = vadd.f32 %v1155_v26, %v285_v36 }
 0x34c   :  { %v1157_v38 = vpop.eup %1156  ;;  %445 = vmatpush.bf16.xpose.msra.mxu2 %v436_v40 }
 0x34d   :  { %v297_v42 = vmul.f32 %v1157_v38, %v281_v29  ;;  %v290_v45 = vsel %vm289_vm14, %v1155_v26, %v286_v41  ;;  %vm302_vm15 = vweird.f32 %v1157_v38 }
 0x34e   :  { %vm303_vm6 = vmor %vm301_vm5, %vm302_vm15  ;;  %v295_v53 = vsel %vm292_vm4, %v294_v50, %v290_v45 }
 0x34f   :  { %v298_v46 = vsub.f32 1.0, %v297_v42  ;;  %v310_v57 = vmul.f32 %v1366_v55, %v295_v53  ;;  %v853_v55 = vsel %vm145_vm1, %v848_v3, 0 }
 0x351   :  { %v299_v48 = vmul.f32 %v1157_v38, %v298_v46 }
 0x353   :  { %v300_v51 = vadd.f32 %v1157_v38, %v299_v48 }
 0x355   :  { %v304_v54 = vsel %vm303_vm6, %v1157_v38, %v300_v51 }
 0x356   :  { %v309_v56 = vsel %vm306_vm7, %v308_v52, %v304_v54 }
 0x357   :  { %v311_v59 = vmul.f32 %v1370_v58, %v309_v56 }
 0x359   :  { %v312_v60 = vpack.c.bf16 %v311_v59, %v310_v57 }
 0x35b   :  { %1070 = vmatmul.msk.bf16.vlgmr.msrb.gmra.mxu2 %vm168_vm3, %v312_v60 }
 0x35d   :  { %v563_v61 = vpop.permute.xlu1 %562 }
 0x35e   :  { %v568_v62 = vsel %vm145_vm1, %v563_v61, 0 }
 0x35f   :  { %577 = vmatpush.bf16.xpose.msrb.mxu1 %v568_v62 }
 0x365   :  { %v658_v0 = vpop.permute.xlu1 %657 }
 0x366   :  { %v663_v1 = vsel %vm145_vm1, %v658_v0, 0  ;;  %1076 = vmatmul.msk.bf16.vlgmr.msrb.gmra.mxu1 %vm145_vm1, %v1352_v39 }
 0x367   :  { %672 = vmatpush.bf16.xpose.msrb.mxu2 %v663_v1 }
 0x36b   :  { %1073 = vmatmul.msk.bf16.vlgmr.msra.gmra.mxu2 %vm145_vm1, %v1384_v2 }
 0x36d   :  { %v753_v58 = vpop.permute.xlu1 %752 }
 0x36e   :  { %v758_v4 = vsel %vm145_vm1, %v753_v58, 0 }
 0x36f   :  { %862 = vmatpush.bf16.xpose.msra.mxu2 %v853_v55  ;;  %767 = vmatpush.bf16.xpose.msra.mxu1 %v758_v4 }
 0x373   :  { %v352_v6 = vpop.f32.mrf.mxu1 }
 0x374   :  { %v357_v7 = vsel %vm140_vm2, -1e+30, %v352_v6 }
 0x375   :  { %v751_v8 = vpop.permute.xlu1 %750  ;;  %v359_v9 = vsel %vm168_vm3, %v357_v7, -inf }
 0x376   :  { %360 = vmax.xlane.f32.xlu2 %v359_v9  ;;  %1080 = vmatmul.msk.bf16.vlgmr.msra.gmra.mxu1 %vm145_vm1, %v751_v8 }
 0x37b   :  { %v354_v10 = vpop.f32.mrf.mxu1  ;;  %1078 = vmatmul.msk.bf16.vlgmr.msrb.gmra.mxu2 %vm145_vm1, %v656_v63 }
 0x37c   :  { %v358_v12 = vsel %vm140_vm2, -1e+30, %v354_v10 }
 0x37d   :  { %v362_v2 = vsel %vm168_vm3, %v358_v12, -inf }
 0x37e   :  { %363 = vmax.xlane.f32.xlu1 %v362_v2 }
 0x38b   :  { %1082 = vmatmul.msk.bf16.vlgmr.msra.gmra.mxu2 %vm145_vm1, %v846_v13 }
 0x3ce   :  { %v1416_v14 = vpop.f32.mrf.mxu2 }
 0x3d6   :  { %v1418_v15 = vpop.f32.mrf.mxu2 }
 0x3de   :  { %v1425_v17 = vpop.f32.mrf.mxu2 }
 0x3e3   :  { %v579_v18 = vpop.f32.mrf.mxu1 }
 0x3e4   :  { %v584_v19 = vsel %vm559_vm8, -1e+30, %v579_v18 }
 0x3e5   :  { %v586_v20 = vsel %vm168_vm3, %v584_v19, -inf }
 0x3e6   :  { %587 = vmax.xlane.f32.xlu2 %v586_v20  ;;  %v1431_v21 = vpop.f32.mrf.mxu2 }
 0x3e7   :  { %v1107_v22 = vpack.i.bf16 %v1431_v21, %v1425_v17 }
 0x3e9   :  { %v361_v27 = vpop.xlane.xlu2 %360 }
 0x3ea   :  { %v365_v31 = vsub.f32 %v357_v7, %v361_v27 }
 0x3eb   :  { %v581_v23 = vpop.f32.mrf.mxu1 }
 0x3ec   :  { %v585_v25 = vsel %vm559_vm8, -1e+30, %v581_v23  ;;  %v367_v35 = vmul.f32 1.442695, %v365_v31 }
 0x3ed   :  { %v589_v26 = vsel %vm168_vm3, %v585_v25, -inf }
 0x3ee   :  { %590 = vmax.xlane.f32.xlu2 %v589_v26  ;;  %v447_v44 = vpop.f32.mrf.mxu2 }
 0x3ef   :  { %v1454_v46 = vsel %vm140_vm2, -1e+30, %v447_v44 }
 0x3f0   :  { %v454_v47 = vsel %vm168_vm3, %v1454_v46, -inf }
 0x3f1   :  { %v364_v28 = vpop.xlane.xlu1 %363 }
 0x3f2   :  { %v366_v29 = vsub.f32 %v358_v12, %v364_v28 }
 0x3f3   :  { %v769_v30 = vpop.f32.mrf.mxu1 }
 0x3f4   :  { %v369_v32 = vmul.f32 1.442695, %v366_v29  ;;  %v774_v33 = vsel %vm559_vm8, -1e+30, %v769_v30 }
 0x3f5   :  { %v776_v34 = vsel %vm168_vm3, %v774_v33, -inf }
 0x3f6   :  { %1158 = vpow2.f32 %v369_v32  ;;  %777 = vmax.xlane.f32.xlu1 %v776_v34  ;;  %v449_v45 = vpop.f32.mrf.mxu2 }
 0x3f7   :  { %1160 = vpow2.f32 %v367_v35  ;;  %v1466_v61 = vsel %vm140_vm2, -1e+30, %v449_v45 }
 0x3f8   :  { %v457_v3 = vsel %vm168_vm3, %v1466_v61, -inf }
 0x3fb   :  { %v771_v36 = vpop.f32.mrf.mxu1 }
 0x3fc   :  { %v1441_v37 = vpop.eup %1158  ;;  %v775_v38 = vsel %vm559_vm8, -1e+30, %v771_v36 }
 0x3fd   :  { %v779_v40 = vsel %vm168_vm3, %v775_v38, -inf  ;;  %v374_v41 = vsel %vm168_vm3, %v1441_v37, 0.0  ;;  %v1448_v42 = vpop.eup %1160 }
 0x3fe   :  { %780 = vmax.xlane.f32.xlu0 %v779_v40  ;;  %375 = vadd.xlane.f32.xlu2 %v374_v41  ;;  %v371_v43 = vsel %vm168_vm3, %v1448_v42, 0.0  ;;  %v674_v49 = vpop.f32.mrf.mxu2 }
 0x3ff   :  { %v1476_v24 = vsel %vm559_vm8, -1e+30, %v674_v49 }
 0x400   :  { %v681_v9 = vsel %vm168_vm3, %v1476_v24, -inf }
 0x406   :  { %372 = vadd.xlane.f32.xlu0 %v371_v43  ;;  %v676_v56 = vpop.f32.mrf.mxu2 }
 0x407   :  { %v1486_v13 = vsel %vm559_vm8, -1e+30, %v676_v56 }
 0x40e   :  { %455 = vmax.xlane.f32.xlu0 %v454_v47  ;;  %v864_v55 = vpop.f32.mrf.mxu2 }
 0x40f   :  { %v1502_v31 = vsel %vm559_vm8, -1e+30, %v864_v55 }
 0x416   :  { %v866_v12 = vpop.f32.mrf.mxu2 }
 0x422   :  { %408 = vrot.lane.b32.xlu0 %v1298_v11, %s1242_s1 }
 0x459   :  { %v588_v48 = vpop.xlane.xlu2 %587 }
 0x45a   :  { %v592_v50 = vsub.f32 %v584_v19, %v588_v48  ;;  %v1490_v19 = vsel %vm559_vm8, -1e+30, %v866_v12 }
 0x45b   :  { %v874_v27 = vsel %vm168_vm3, %v1490_v19, -inf }
 0x45c   :  { %v594_v51 = vmul.f32 1.442695, %v592_v50 }
 0x45e   :  { %1162 = vpow2.f32 %v594_v51 }
 0x461   :  { %v591_v52 = vpop.xlane.xlu2 %590 }
 0x462   :  { %v593_v53 = vsub.f32 %v585_v25, %v591_v52  ;;  %v684_v25 = vsel %vm168_vm3, %v1486_v13, -inf }
 0x464   :  { %v1460_v54 = vpop.eup %1162  ;;  %v596_v57 = vmul.f32 1.442695, %v593_v53 }
 0x465   :  { %v598_v59 = vsel %vm168_vm3, %v1460_v54, 0.0 }
 0x466   :  { %1164 = vpow2.f32 %v596_v57  ;;  %599 = vadd.xlane.f32.xlu2 %v598_v59 }
 0x469   :  { %v778_v60 = vpop.xlane.xlu1 %777 }
 0x46a   :  { %v782_v62 = vsub.f32 %v774_v33, %v778_v60 }
 0x46c   :  { %v1468_v63 = vpop.eup %1164  ;;  %v784_v0 = vmul.f32 1.442695, %v782_v62 }
 0x46d   :  { %v601_v1 = vsel %vm168_vm3, %v1468_v63, 0.0 }
 0x46e   :  { %1166 = vpow2.f32 %v784_v0  ;;  %602 = vadd.xlane.f32.xlu1 %v601_v1  ;;  %458 = vmax.xlane.f32.xlu2 %v457_v3 }
 0x471   :  { %v781_v58 = vpop.xlane.xlu0 %780  ;;  %v376_v6 = vpop.xlane.xlu2 %375 }
 0x472   :  { %v783_v4 = vsub.f32 %v775_v38, %v781_v58  ;;  %1168 = vrcp.f32 %v376_v6  ;;  %v871_v38 = vsel %vm168_vm3, %v1502_v31, -inf  ;;  %v402_v47 = vand.u32 2147483648, %v376_v6 }
 0x473   :  { %vm396_vm12 = vweird.f32 %v376_v6 }
 0x474   :  { %v1478_v7 = vpop.eup %1166  ;;  %v786_v8 = vmul.f32 1.442695, %v783_v4  ;;  %v403_v52 = vor.u32 1.1754944e-38, %v402_v47 }
 0x475   :  { %v788_v10 = vsel %vm168_vm3, %v1478_v7, 0.0 }
 0x476   :  { %1170 = vpow2.f32 %v786_v8  ;;  %682 = vmax.xlane.f32.xlu2 %v681_v9  ;;  %789 = vadd.xlane.f32.xlu1 %v788_v10 }
 0x478   :  { %v1169_v18 = vpop.eup %1168 }
 0x479   :  { %v373_v2 = vpop.xlane.xlu0 %372  ;;  %v392_v26 = vmul.f32 %v1169_v18, %v376_v6  ;;  %vm397_vm9 = vweird.f32 %v1169_v18 }
 0x47a   :  { %1172 = vrcp.f32 %v373_v2  ;;  %v388_v43 = vand.u32 2147483648, %v373_v2  ;;  %vm382_vm10 = vweird.f32 %v373_v2  ;;  %v386_v16 = vand.u32 2147483647, %v373_v2  ;;  %vm398_vm13 = vmor %vm396_vm12, %vm397_vm9 }
 0x47b   :  { %v393_v32 = vsub.f32 1.0, %v392_v26 }
 0x47c   :  { %v1492_v20 = vpop.eup %1170  ;;  %v389_v49 = vor.u32 1.1754944e-38, %v388_v43  ;;  %vm387_vm14 = vcmp.eq.f32.partialorder %v386_v16, 8.507059e+37 }
 0x47d   :  { %v791_v23 = vsel %vm168_vm3, %v1492_v20, 0.0  ;;  %v394_v40 = vmul.f32 %v1169_v18, %v393_v32 }
 0x47e   :  { %792 = vadd.xlane.f32.xlu0 %v791_v23  ;;  %685 = vmax.xlane.f32.xlu2 %v684_v25 }
 0x47f   :  { %875 = vmax.xlane.f32.xlu1 %v874_v27  ;;  %v395_v44 = vadd.f32 %v1169_v18, %v394_v40 }
 0x480   :  { %v1173_v28 = vpop.eup %1172 }
 0x481   :  { %v378_v29 = vmul.f32 %v1173_v28, %v373_v2  ;;  %v456_v30 = vpop.xlane.xlu0 %455  ;;  %vm383_vm2 = vweird.f32 %v1173_v28  ;;  %v399_v51 = vsel %vm398_vm13, %v1169_v18, %v395_v44 }
 0x482   :  { %v460_v33 = vsub.f32 %v1454_v46, %v456_v30  ;;  %vm384_vm11 = vmor %vm382_vm10, %vm383_vm2  ;;  %v400_v46 = vand.u32 2147483647, %v376_v6 }
 0x483   :  { %v379_v34 = vsub.f32 1.0, %v378_v29 }
 0x484   :  { %v462_v35 = vmul.f32 1.442695, %v460_v33  ;;  %vm401_vm15 = vcmp.eq.f32.partialorder %v400_v46, 8.507059e+37 }
 0x485   :  { %v380_v36 = vmul.f32 %v1173_v28, %v379_v34  ;;  %v404_v56 = vsel %vm401_vm15, %v403_v52, %v399_v51 }
 0x486   :  { %1174 = vpow2.f32 %v462_v35  ;;  %872 = vmax.xlane.f32.xlu2 %v871_v38  ;;  %v406_v59 = vmul.f32 %v1441_v37, %v404_v56 }
 0x487   :  { %v381_v41 = vadd.f32 %v1173_v28, %v380_v36 }
 0x489   :  { %v385_v48 = vsel %vm384_vm11, %v1173_v28, %v381_v41 }
 0x48a   :  { %v390_v53 = vsel %vm387_vm14, %v389_v49, %v385_v48 }
 0x48b   :  { %v405_v57 = vmul.f32 %v1448_v42, %v390_v53 }
 0x48c   :  { %v1507_v45 = vpop.eup %1174 }
 0x48d   :  { %v466_v50 = vsel %vm168_vm3, %v1507_v45, 0.0  ;;  %v407_v62 = vpack.c.bf16 %v406_v59, %v405_v57 }
 0x48e   :  { %467 = vadd.xlane.f32.xlu1 %v466_v50 }
 0x494   :  { %v409_v60 = vpop.permute.xlu0 %408 }
 0x495   :  { %421 = vmatpush.bf16.msra.mxu3 %v409_v60 }
 0x498   :  { %1072 = vmatmul.msk.bf16.vlgmr.msra.gmra.mxu3 %vm168_vm3, %v407_v62 }
 0x49e   :  { %503 = vrot.lane.b32.xlu2 %v1298_v11, %s1243_s21 }
 0x4d9   :  { %v600_v0 = vpop.xlane.xlu2 %599 }
 0x4da   :  { %1176 = vrcp.f32 %v600_v0  ;;  %v615_v2 = vand.u32 2147483648, %v600_v0  ;;  %vm609_vm5 = vweird.f32 %v600_v0  ;;  %v613_v25 = vand.u32 2147483647, %v600_v0 }
 0x4dc   :  { %v616_v32 = vor.u32 1.1754944e-38, %v615_v2  ;;  %vm614_vm2 = vcmp.eq.f32.partialorder %v613_v25, 8.507059e+37 }
 0x4e0   :  { %v1177_v1 = vpop.eup %1176 }
 0x4e1   :  { %v605_v3 = vmul.f32 %v1177_v1, %v600_v0  ;;  %v459_v55 = vpop.xlane.xlu2 %458  ;;  %v603_v58 = vpop.xlane.xlu1 %602  ;;  %vm610_vm4 = vweird.f32 %v1177_v1 }
 0x4e2   :  { %v461_v4 = vsub.f32 %v1466_v61, %v459_v55  ;;  %1178 = vrcp.f32 %v603_v58  ;;  %v629_v26 = vand.u32 2147483648, %v603_v58  ;;  %vm611_vm6 = vmor %vm609_vm5, %vm610_vm4  ;;  %v627_v28 = vand.u32 2147483647, %v603_v58 }
 0x4e3   :  { %v606_v42 = vsub.f32 1.0, %v605_v3  ;;  %vm623_vm8 = vweird.f32 %v603_v58 }
 0x4e4   :  { %v464_v37 = vmul.f32 1.442695, %v461_v4  ;;  %v630_v33 = vor.u32 1.1754944e-38, %v629_v26  ;;  %vm628_vm10 = vcmp.eq.f32.partialorder %v627_v28, 8.507059e+37 }
 0x4e5   :  { %v607_v6 = vmul.f32 %v1177_v1, %v606_v42 }
 0x4e6   :  { %1180 = vpow2.f32 %v464_v37 }
 0x4e7   :  { %v608_v12 = vadd.f32 %v1177_v1, %v607_v6 }
 0x4e8   :  { %v1179_v8 = vpop.eup %1178 }
 0x4e9   :  { %v619_v9 = vmul.f32 %v1179_v8, %v603_v58  ;;  %v683_v10 = vpop.xlane.xlu2 %682  ;;  %vm624_vm7 = vweird.f32 %v1179_v8  ;;  %v612_v30 = vsel %vm611_vm6, %v1177_v1, %v608_v12  ;;  %v1556_v53 = vpop.xlane.xlu1 %789 }
 0x4ea   :  { %v687_v11 = vsub.f32 %v1476_v24, %v683_v10  ;;  %vm625_vm9 = vmor %vm623_vm8, %vm624_vm7  ;;  %v617_v34 = vsel %vm614_vm2, %v616_v32, %v612_v30 }
 0x4eb   :  { %v620_v18 = vsub.f32 1.0, %v619_v9  ;;  %v1529_v44 = vmul.f32 %v1460_v54, %v617_v34 }
 0x4ec   :  { %v1518_v23 = vpop.eup %1180  ;;  %v689_v61 = vmul.f32 1.442695, %v687_v11 }
 0x4ed   :  { %v621_v27 = vmul.f32 %v1179_v8, %v620_v18  ;;  %v469_v29 = vsel %vm168_vm3, %v1518_v23, 0.0 }
 0x4ee   :  { %1182 = vpow2.f32 %v689_v61  ;;  %470 = vadd.xlane.f32.xlu0 %v469_v29 }
 0x4ef   :  { %v622_v24 = vadd.f32 %v1179_v8, %v621_v27 }
 0x4f1   :  { %v626_v35 = vsel %vm625_vm9, %v1179_v8, %v622_v24  ;;  %v686_v36 = vpop.xlane.xlu2 %685 }
 0x4f2   :  { %v631_v38 = vsel %vm628_vm10, %v630_v33, %v626_v35  ;;  %v688_v41 = vsub.f32 %v1486_v13, %v686_v36  ;;  %v876_v59 = vpop.xlane.xlu1 %875 }
 0x4f3   :  { %v1523_v40 = vmul.f32 %v1468_v63, %v631_v38  ;;  %v878_v60 = vsub.f32 %v1490_v19, %v876_v59 }
 0x4f4   :  { %v1526_v43 = vpop.eup %1182  ;;  %v691_v16 = vmul.f32 1.442695, %v688_v41 }
 0x4f5   :  { %v693_v47 = vsel %vm168_vm3, %v1526_v43, 0.0  ;;  %v634_v46 = vpack.c.bf16 %v1523_v40, %v1529_v44  ;;  %v881_v62 = vmul.f32 1.442695, %v878_v60  ;;  %v1206_v60 = vld [vmem:[%s1656_s3 + $0x8] sm:$0xff]  ;;  %s1247_s3 = smov 24  }
 0x4f6   :  { %694 = vadd.xlane.f32.xlu2 %v693_v47  ;;  %1184 = vpow2.f32 %v691_v16 }
 0x4f9   :  { %v873_v48 = vpop.xlane.xlu2 %872 }
 0x4fa   :  { %v877_v63 = vsub.f32 %v1502_v31, %v873_v48 }
 0x4fc   :  { %v879_v49 = vmul.f32 1.442695, %v877_v63  ;;  %v1536_v50 = vpop.eup %1184 }
 0x4fd   :  { %v696_v54 = vsel %vm168_vm3, %v1536_v50, 0.0 }
 0x4fe   :  { %1186 = vpow2.f32 %v879_v49  ;;  %697 = vadd.xlane.f32.xlu1 %v696_v54 }
 0x4ff   :  { %1188 = vpow2.f32 %v881_v62 }
 0x501   :  { %v504_v13 = vpop.permute.xlu2 %503 }
 0x502   :  { %730 = vrot.lane.b32.xlu0 %v1352_v39, %s1238_s15  ;;  %516 = vmatpush.bf16.msrb.mxu0 %v504_v13 }
 0x504   :  { %v1542_v51 = vpop.eup %1186 }
 0x505   :  { %v883_v52 = vsel %vm168_vm3, %v1542_v51, 0.0  ;;  %v1560_v17 = vpop.eup %1188 }
 0x506   :  { %884 = vadd.xlane.f32.xlu2 %v883_v52  ;;  %v886_v21 = vsel %vm168_vm3, %v1560_v17, 0.0 }
 0x50a   :  { %920 = vrot.lane.b32.xlu0 %v1352_v39, %s1243_s21 }
 0x512   :  { %1108 = vrot.lane.b32.xlu0 %v1107_v22, %s1244_s22  ;;  %v468_v22 = vpop.xlane.xlu1 %467 }
 0x513   :  { %1190 = vrcp.f32 %v468_v22  ;;  %v483_v6 = vand.u32 2147483648, %v468_v22  ;;  %vm477_vm12 = vweird.f32 %v468_v22  ;;  %v481_v9 = vand.u32 2147483647, %v468_v22 }
 0x515   :  { %v484_v25 = vor.u32 1.1754944e-38, %v483_v6  ;;  %vm482_vm4 = vcmp.eq.f32.partialorder %v481_v9, 8.507059e+37 }
 0x517   :  { %635 = vrot.lane.b32.xlu1 %v1352_v39, %s1237_s14 }
 0x519   :  { %v1191_v0 = vpop.eup %1190 }
 0x51a   :  { %v473_v1 = vmul.f32 %v1191_v0, %v468_v22  ;;  %vm478_vm11 = vweird.f32 %v1191_v0 }
 0x51b   :  { %v423_v31 = vpop.f32.mrf.mxu3  ;;  %vm1566_vm13 = vmor %vm477_vm12, %vm478_vm11 }
 0x51c   :  { %v474_v55 = vsub.f32 1.0, %v473_v1 }
 0x51e   :  { %825 = vrot.lane.b32.xlu2 %v1352_v39, %s1242_s1  ;;  %v1564_v39 = vpop.xlane.xlu0 %792  ;;  %v475_v58 = vmul.f32 %v1191_v0, %v474_v55 }
 0x520   :  { %v476_v37 = vadd.f32 %v1191_v0, %v475_v58 }
 0x522   :  { %v480_v18 = vsel %vm1566_vm13, %v1191_v0, %v476_v37 }
 0x523   :  { %v425_v56 = vpop.f32.mrf.mxu3  ;;  %v485_v30 = vsel %vm482_vm4, %v484_v25, %v480_v18  ;;  %vm813_vm4 = vweird.f32 %v1564_v39  ;;  %v805_v18 = vand.u32 2147483648, %v1556_v53  ;;  %v803_v25 = vand.u32 2147483647, %v1556_v53 }
 0x524   :  { %v1112_v57 = vpack.i.bf16 %v425_v56, %v423_v31  ;;  %v500_v35 = vmul.f32 %v1507_v45, %v485_v30 }
 0x526   :  { %1113 = vrot.lane.b32.xlu2 %v1112_v57, %s1245_s23 }
 0x52e   :  { %972 = vrot.lane.b32.xlu2 %v1294_v5, %s1246_s26 }
 0x541   :  { %887 = vadd.xlane.f32.xlu1 %v886_v21 }
 0x55a   :  { %974 = vrot.lane.b32.xlu1 %v1206_v60, %s1246_s26 }
 0x561   :  { %v471_v3 = vpop.xlane.xlu0 %470 }
 0x562   :  { %1192 = vrcp.f32 %v471_v3  ;;  %v497_v10 = vand.u32 2147483648, %v471_v3  ;;  %v495_v2 = vand.u32 2147483647, %v471_v3  ;;  %vm491_vm15 = vweird.f32 %v471_v3 }
 0x564   :  { %v498_v27 = vor.u32 1.1754944e-38, %v497_v10  ;;  %vm496_vm6 = vcmp.eq.f32.partialorder %v495_v2, 8.507059e+37  ;;  %v817_v2 = vand.u32 2147483647, %v1564_v39 }
 0x568   :  { %v1193_v4 = vpop.eup %1192 }
 0x569   :  { %v487_v19 = vmul.f32 %v1193_v4, %v471_v3  ;;  %v695_v42 = vpop.xlane.xlu2 %694  ;;  %vm492_vm14 = vweird.f32 %v1193_v4 }
 0x56a   :  { %1194 = vrcp.f32 %v695_v42  ;;  %vm493_vm5 = vmor %vm491_vm15, %vm492_vm14  ;;  %v710_v63 = vand.u32 2147483648, %v695_v42  ;;  %vm704_vm8 = vweird.f32 %v695_v42  ;;  %v708_v49 = vand.u32 2147483647, %v695_v42 }
 0x56b   :  { %v488_v8 = vsub.f32 1.0, %v487_v19 }
 0x56c   :  { %v711_v59 = vor.u32 1.1754944e-38, %v710_v63  ;;  %vm709_vm10 = vcmp.eq.f32.partialorder %v708_v49, 8.507059e+37 }
 0x56d   :  { %v489_v11 = vmul.f32 %v1193_v4, %v488_v8 }
 0x56f   :  { %v490_v26 = vadd.f32 %v1193_v4, %v489_v11 }
 0x570   :  { %v1195_v61 = vpop.eup %1194 }
 0x571   :  { %v494_v28 = vsel %vm493_vm5, %v1193_v4, %v490_v26  ;;  %v700_v29 = vmul.f32 %v1195_v61, %v695_v42  ;;  %v698_v32 = vpop.xlane.xlu1 %697  ;;  %vm705_vm7 = vweird.f32 %v1195_v61 }
 0x572   :  { %v499_v24 = vsel %vm496_vm6, %v498_v27, %v494_v28  ;;  %1196 = vrcp.f32 %v698_v32  ;;  %vm1577_vm2 = vmor %vm704_vm8, %vm705_vm7  ;;  %v724_v13 = vand.u32 2147483648, %v698_v32  ;;  %v722_v56 = vand.u32 2147483647, %v698_v32 }
 0x573   :  { %v701_v33 = vsub.f32 1.0, %v700_v29  ;;  %v501_v36 = vmul.f32 %v1518_v23, %v499_v24  ;;  %1198 = vrcp.f32 %v1564_v39  ;;  %vm718_vm11 = vweird.f32 %v698_v32 }
 0x574   :  { %v731_v34 = vpop.permute.xlu0 %730  ;;  %1200 = vrcp.f32 %v1556_v53  ;;  %v725_v0 = vor.u32 1.1754944e-38, %v724_v13  ;;  %vm723_vm13 = vcmp.eq.f32.partialorder %v722_v56, 8.507059e+37  ;;  %vm799_vm6 = vweird.f32 %v1556_v53 }
 0x575   :  { %743 = vmatpush.bf16.msra.mxu0 %v731_v34  ;;  %v702_v38 = vmul.f32 %v1195_v61, %v701_v33  ;;  %v502_v41 = vpack.c.bf16 %v501_v36, %v500_v35  ;;  %vm818_vm8 = vcmp.eq.f32.partialorder %v817_v2, 8.507059e+37 }
 0x577   :  { %1074 = vmatmul.msk.bf16.vlgmr.msrb.gmra.mxu0 %vm168_vm3, %v502_v41  ;;  %v703_v47 = vadd.f32 %v1195_v61, %v702_v38 }
 0x578   :  { %v1197_v16 = vpop.eup %1196 }
 0x579   :  { %v714_v48 = vmul.f32 %v1197_v16, %v698_v32  ;;  %v707_v52 = vsel %vm1577_vm2, %v1195_v61, %v703_v47  ;;  %vm719_vm9 = vweird.f32 %v1197_v16  ;;  %v1199_v57 = vpop.eup %1198  ;;  %v1587_v1 = vpop.xlane.xlu2 %884  ;;  %vm804_vm2 = vcmp.eq.f32.partialorder %v803_v25, 8.507059e+37 }
 0x57a   :  { %v1201_v21 = vpop.eup %1200  ;;  %v712_v22 = vsel %vm709_vm10, %v711_v59, %v707_v52  ;;  %vm720_vm12 = vmor %vm718_vm11, %vm719_vm9  ;;  %v809_v3 = vmul.f32 %v1199_v57, %v1564_v39  ;;  %vm814_vm14 = vweird.f32 %v1199_v57  ;;  %1202 = vrcp.f32 %v1587_v1 }
 0x57b   :  { %v715_v54 = vsub.f32 1.0, %v714_v48  ;;  %v795_v4 = vmul.f32 %v1201_v21, %v1556_v53  ;;  %v727_v19 = vmul.f32 %v1526_v43, %v712_v22  ;;  %v819_v43 = vand.u32 2147483648, %v1564_v39  ;;  %vm815_vm5 = vmor %vm813_vm4, %vm814_vm14 }
 0x57c   :  { %v921_v45 = vpop.permute.xlu0 %920  ;;  %v810_v42 = vsub.f32 1.0, %v809_v3  ;;  %vm800_vm15 = vweird.f32 %v1201_v21  ;;  %vm894_vm10 = vweird.f32 %v1587_v1 }
 0x57d   :  { %933 = vmatpush.bf16.msrb.mxu0 %v921_v45  ;;  %v716_v31 = vmul.f32 %v1197_v16, %v715_v54  ;;  %v796_v6 = vsub.f32 1.0, %v795_v4  ;;  %vm801_vm7 = vmor %vm799_vm6, %vm800_vm15  ;;  %v820_v40 = vor.u32 1.1754944e-38, %v819_v43 }
 0x57e   :  { %v811_v8 = vmul.f32 %v1199_v57, %v810_v42 }
 0x57f   :  { %v717_v62 = vadd.f32 %v1197_v16, %v716_v31  ;;  %v797_v12 = vmul.f32 %v1201_v21, %v796_v6  ;;  %v1003_v6 = vld [vmem:[%s1655_s2] sm:$0xff] }
 0x580   :  { %v812_v11 = vadd.f32 %v1199_v57, %v811_v8  ;;  %v1203_v30 = vpop.eup %1202  ;;  %v1004_v8 = vld [vmem:[%s1655_s2 + $0x8] sm:$0xff] }
 0x581   :  { %v721_v55 = vsel %vm720_vm12, %v1197_v16, %v717_v62  ;;  %v826_v10 = vpop.permute.xlu2 %825  ;;  %v890_v53 = vmul.f32 %v1203_v30, %v1587_v1  ;;  %vm895_vm9 = vweird.f32 %v1203_v30 }
 0x582   :  { %v726_v58 = vsel %vm723_vm13, %v725_v0, %v721_v55  ;;  %v816_v26 = vsel %vm815_vm5, %v1199_v57, %v812_v11  ;;  %vm896_vm11 = vmor %vm894_vm10, %vm895_vm9  ;;  %vm551_vm5 = vcmask 195584  }
 0x583   :  { %v728_v5 = vmul.f32 %v1536_v50, %v726_v58  ;;  %v798_v50 = vadd.f32 %v1201_v21, %v797_v12  ;;  %v821_v61 = vsel %vm818_vm8, %v820_v40, %v816_v26  ;;  %v891_v32 = vsub.f32 1.0, %v890_v53 }
 0x584   :  { %v823_v28 = vmul.f32 %v1492_v20, %v821_v61  ;;  %v900_v20 = vand.u32 2147483648, %v1587_v1 }
 0x585   :  { %v729_v37 = vpack.c.bf16 %v728_v5, %v727_v19  ;;  %v802_v44 = vsel %vm801_vm7, %v1201_v21, %v798_v50  ;;  %v892_v33 = vmul.f32 %v1203_v30, %v891_v32 }
 0x586   :  { %v901_v63 = vor.u32 1.1754944e-38, %v900_v20 }
 0x587   :  { %1079 = vmatmul.msk.bf16.vlgmr.msra.gmra.mxu0 %vm168_vm3, %v729_v37  ;;  %v893_v35 = vadd.f32 %v1203_v30, %v892_v33  ;;  %v1248_v37 = vmov 0  }
 0x588   :  { %1137 = vset.pattern.permute.xlu1 %v1248_v37  ;;  %1138 = vset.pattern.permute.xlu2 %v1248_v37 }
 0x589   :  { %v636_v9 = vpop.permute.xlu1 %635  ;;  %v897_v16 = vsel %vm896_vm11, %v1203_v30, %v893_v35  ;;  %v1114_v4 = vpop.permute.xlu2 %1113  ;;  %1139 = vset.pattern.permute.xlu0 %v1248_v37  ;;  %1009 = vperm.xlu1 %1137, %v1003_v6  }
 0x58a   :  { %648 = vmatpush.bf16.msrb.mxu3 %v636_v9  ;;  %v1109_v9 = vpop.permute.xlu0 %1108  ;;  %v1116_v11 = vunpack.i.h.bf16 %v1114_v4  ;;  %v1115_v43 = vunpack.i.l.bf16 %v1114_v4 }
 0x58b   :  { %v1110_v12 = vunpack.i.l.bf16 %v1109_v9 }
 0x58d   :  { %1077 = vmatmul.msk.bf16.vlgmr.msrb.gmra.mxu3 %vm168_vm3, %v634_v46  ;;  %v806_v46 = vor.u32 1.1754944e-38, %v805_v18  ;;  %v547_v18 = vsel %vm145_vm1, %v1416_v14, %v1110_v12  ;;  %v1006_v14 = vld [vmem:[%s1655_s2 + $0x18] sm:$0xff] }
 0x58e   :  { %838 = vmatpush.bf16.msra.mxu3 %v826_v10  ;;  %v1111_v10 = vunpack.i.h.bf16 %v1109_v9 }
 0x58f   :  { %v807_v27 = vsel %vm804_vm2, %v806_v46, %v802_v44  ;;  %v549_v44 = vsel %vm168_vm3, %v547_v18, %v1115_v43 }
 0x590   :  { %v822_v39 = vmul.f32 %v1478_v7, %v807_v27  ;;  %v898_v7 = vand.u32 2147483647, %v1587_v1  ;;  %v548_v2 = vsel %vm145_vm1, %v1418_v15, %v1111_v10  ;;  %v1005_v15 = vld [vmem:[%s1655_s2 + $0x10] sm:$0xff]  ;;  %s1249_s2 = smov [#allocation2]  }
 0x591   :  { %v973_v42 = vpop.permute.xlu2 %972  ;;  %v550_v40 = vsel %vm168_vm3, %v548_v2, %v1116_v11  ;;  %1024 = vperm.xlu1 %1137, %v1006_v14   ;;  %s1039_s9 = sshll.u32 %s1249_s2, 4  ;;  %s1040_s9 = int_to_ptr.vmem [resolvable:$true] %s1039_s9 }
 0x592   :  { %v824_v29 = vpack.c.bf16 %v823_v28, %v822_v39  ;;  %vm899_vm13 = vcmp.eq.f32.partialorder %v898_v7, 8.507059e+37 }
 0x593   :  { %v902_v54 = vsel %vm899_vm13, %v901_v63, %v897_v16 }
 0x594   :  { %v917_v52 = vmul.f32 %v1542_v51, %v902_v54 }
 0x59d   :  { %1081 = vmatmul.msk.bf16.vlgmr.msra.gmra.mxu3 %vm168_vm3, %v824_v29 }
 0x5b4   :  { %v888_v24 = vpop.xlane.xlu1 %887 }
 0x5b5   :  { %1204 = vrcp.f32 %v888_v24  ;;  %v914_v41 = vand.u32 2147483648, %v888_v24  ;;  %v912_v48 = vand.u32 2147483647, %v888_v24  ;;  %vm908_vm14 = vweird.f32 %v888_v24 }
 0x5b7   :  { %v915_v45 = vor.u32 1.1754944e-38, %v914_v41  ;;  %vm913_vm4 = vcmp.eq.f32.partialorder %v912_v48, 8.507059e+37 }
 0x5bb   :  { %v1205_v34 = vpop.eup %1204 }
 0x5bc   :  { %v904_v36 = vmul.f32 %v1205_v34, %v888_v24  ;;  %vm909_vm12 = vweird.f32 %v1205_v34 }
 0x5bd   :  { %vm910_vm15 = vmor %vm908_vm14, %vm909_vm12 }
 0x5be   :  { %v905_v38 = vsub.f32 1.0, %v904_v36 }
 0x5c0   :  { %v906_v47 = vmul.f32 %v1205_v34, %v905_v38 }
 0x5c2   :  { %v907_v49 = vadd.f32 %v1205_v34, %v906_v47 }
 0x5c4   :  { %v911_v23 = vsel %vm910_vm15, %v1205_v34, %v907_v49 }
 0x5c5   :  { %v916_v13 = vsel %vm913_vm4, %v915_v45, %v911_v23 }
 0x5c6   :  { %v918_v31 = vmul.f32 %v1560_v17, %v916_v13 }
 0x5c8   :  { %v919_v56 = vpack.c.bf16 %v918_v31, %v917_v52 }
 0x5ca   :  { %1083 = vmatmul.msk.bf16.vlgmr.msrb.gmra.mxu0 %vm168_vm3, %v919_v56 }
 0x5cc   :  { %v975_v17 = vpop.permute.xlu1 %974 }
 0x5cd   :  { %990 = vmatpush.bf16.msrb.mxu1 %v975_v17 }
 0x5d1   :  { %991 = vmatpush.bf16.msrb.mxu1 %v973_v42 }
 0x5f4   :  { %v518_v57 = vpop.f32.mrf.mxu0 }
 0x5fb   :  { %v1010_v47 = vpop.permute.xlu1 %1009 }
 0x5fc   :  { %v520_v59 = vpop.f32.mrf.mxu0 }
 0x5fd   :  { %v1122_v60 = vpack.i.bf16 %v520_v59, %v518_v57 }
 0x5ff   :  { %1123 = vrot.lane.b32.xlu0 %v1122_v60, %s1247_s3 }
 0x603   :  { %v1025_v56 = vpop.permute.xlu1 %1024 }
 0x604   :  { %v745_v62 = vpop.f32.mrf.mxu0 }
 0x60c   :  { %v747_v21 = vpop.f32.mrf.mxu0 }
 0x60d   :  { %v1127_v22 = vpack.i.bf16 %v747_v21, %v745_v62 }
 0x60f   :  { %1128 = vrot.lane.b32.xlu0 %v1127_v22, %s1244_s22 }
 0x610   :  { %v650_v0 = vpop.f32.mrf.mxu3 }
 0x618   :  { %v652_v1 = vpop.f32.mrf.mxu3 }
 0x620   :  { %v840_v3 = vpop.f32.mrf.mxu3 }
 0x628   :  { %v842_v55 = vpop.f32.mrf.mxu3 }
 0x629   :  { %v1117_v51 = vpack.i.bf16 %v842_v55, %v840_v3 }
 0x62b   :  { %1118 = vrot.lane.b32.xlu2 %v1117_v51, %s1245_s23 }
 0x633   :  { %1014 = vperm.xlu2 %1138, %v1004_v8  }
 0x647   :  { %v935_v58 = vpop.f32.mrf.mxu0 }
 0x64f   :  { %v937_v19 = vpop.f32.mrf.mxu0 }
 0x650   :  { %v1132_v5 = vpack.i.bf16 %v937_v19, %v935_v58 }
 0x652   :  { %1133 = vrot.lane.b32.xlu0 %v1132_v5, %s1247_s3 }
 0x65a   :  { %1019 = vperm.xlu0 %1139, %v1005_v15  }
 0x671   :  { %v1124_v50 = vpop.permute.xlu0 %1123 }
 0x672   :  { %v1126_v25 = vunpack.i.h.bf16 %v1124_v50  ;;  %v1125_v26 = vunpack.i.l.bf16 %v1124_v50 }
 0x674   :  { %v553_v46 = vsel %vm551_vm5, %v550_v40, %v1126_v25  ;;  %v552_v61 = vsel %vm551_vm5, %v549_v44, %v1125_v26 }
 0x675   :  { %v970_v27 = vpack.c.bf16 %v553_v46, %v552_v61 }
 0x677   :  { %1084 = vmatmul.msk.bf16.vlgmr.msrb.gmra.mxu1 %vm110_vm0, %v970_v27 }
 0x681   :  { %v1129_v28 = vpop.permute.xlu0 %1128 }
 0x682   :  { %v1131_v29 = vunpack.i.h.bf16 %v1129_v28  ;;  %v1130_v30 = vunpack.i.l.bf16 %v1129_v28 }
 0x684   :  { %v964_v33 = vsel %vm145_vm1, %v650_v0, %v1130_v30  ;;  %v965_v34 = vsel %vm145_vm1, %v652_v1, %v1131_v29 }
 0x685   :  { %v1119_v39 = vpop.permute.xlu2 %1118 }
 0x686   :  { %v1121_v53 = vunpack.i.h.bf16 %v1119_v39  ;;  %v1120_v32 = vunpack.i.l.bf16 %v1119_v39 }
 0x688   :  { %v967_v20 = vsel %vm168_vm3, %v965_v34, %v1121_v53  ;;  %v966_v7 = vsel %vm168_vm3, %v964_v33, %v1120_v32 }
 0x68d   :  { %v1015_v49 = vpop.permute.xlu2 %1014 }
 0x6c4   :  { %v1134_v24 = vpop.permute.xlu0 %1133 }
 0x6c5   :  { %v1136_v35 = vunpack.i.h.bf16 %v1134_v24  ;;  %v1135_v36 = vunpack.i.l.bf16 %v1134_v24 }
 0x6c7   :  { %v968_v38 = vsel %vm551_vm5, %v966_v7, %v1135_v36  ;;  %v969_v41 = vsel %vm551_vm5, %v967_v20, %v1136_v35 }
 0x6c8   :  { %v971_v16 = vpack.c.bf16 %v969_v41, %v968_v38 }
 0x6ca   :  { %1085 = vmatmul.msk.bf16.gmra.mxu1 %vm110_vm0, %v971_v16 }
 0x6cc   :  { %v1020_v23 = vpop.permute.xlu0 %1019 }
 0x6f4   :  { %v993_v48 = vpop.f32.mrf.mxu1 }
 0x6f5   :  { %v1027_v63 = vmul.f32 %v1010_v47, %v993_v48 }
 0x6f7   :  { %1031 = vst.msk [vmem:[#allocation2] sm:$0xff] %vm110_vm0, %v1027_v63 }
 0x6fc   :  { %v995_v54 = vpop.f32.mrf.mxu1 }
 0x6fd   :  { %v1028_v45 = vmul.f32 %v1015_v49, %v995_v54 }
 0x6ff   :  { %1032 = vst.msk [vmem:[#allocation2 + $0x8] sm:$0xff] %vm110_vm0, %v1028_v45 }
 0x747   :  { %v998_v13 = vpop.f32.mrf.mxu1 }
 0x748   :  { %v1029_v52 = vmul.f32 %v1020_v23, %v998_v13 }
 0x74a   :  { %1033 = vst.msk [vmem:[#allocation2 + $0x10] sm:$0xff] %vm110_vm0, %v1029_v52 }
 0x74f   :  { %v1000_v31 = vpop.f32.mrf.mxu1 }
 0x750   :  { %v1030_v57 = vmul.f32 %v1025_v56, %v1000_v31 }
 0x752   :  { %1034 = vst.msk [vmem:[#allocation2 + $0x18] sm:$0xff] %vm110_vm0, %v1030_v57 }
 0x753   :  { %1047 = dma.vmem_to_hbm [thread:$0]  %s1040_s9, 512, %s1042_s0, [#allocation3], %s1250_s12, %s1250_s12, %s1244_s22  }
 0x754   :  { %1231 = dma.done.wait [#allocation3], 512  }
 0x755   :  { %1232 = vsyncadd [#allocation3], 4294966784 }
 0x756   :  { %1052 = vsyncpa [#allocation3], 1 }

</bundles_post_ra>
